<compile_context>
chip_gen: v7x
topology: tpu7x:2x2x1
jax: 0.10.0
libtpu: 0.0.40
codegen_flags: <defaults>
</compile_context>

<pallas_src>
import functools

import jax
import jax.numpy as jnp
import numpy as np
from jax.experimental import pallas as pl
from jax.experimental.pallas import tpu as pltpu


def _round_up(v, m):
    return -(-v // m) * m


# ----------------------------- fused WN kernel ------------------------------

def _wn_fused_kernel(*refs, kernel_size, dilations, pads, center, T, H,
                     has_g, matmul_dtype):
    if has_g:
        (x_ref, mask_ref, g_ref, wt_ref, ws_ref, bt_ref, bs_ref,
         wct_ref, wcs_ref, wres_ref, bres_ref, wskip_ref, bskip_ref,
         o_ref, xpad_sc, out_sc) = refs
    else:
        (x_ref, mask_ref, wt_ref, ws_ref, bt_ref, bs_ref,
         wres_ref, bres_ref, wskip_ref, bskip_ref,
         o_ref, xpad_sc, out_sc) = refs

    n_layers = len(dilations)
    mask = mask_ref[...].astype(jnp.float32)                          # (T, 1)

    # Zero the halo once; it stays zero across layers (conv zero-padding).
    xpad_sc[...] = jnp.zeros_like(xpad_sc)
    xpad_sc[pl.ds(center, T), :] = x_ref[...].astype(jnp.float32)
    out_sc[...] = jnp.zeros_like(out_sc)                              # f32 skip acc

    if has_g:
        g_m = g_ref[...].astype(matmul_dtype)                         # (T, gin)

    for i in range(n_layers):
        d, pad = dilations[i], pads[i]
        # Dilated conv H -> 2H: k shifted slices concatenated -> one matmul per
        # gate with contraction depth k*H (better MXU fill than k tiny dots).
        xs = jnp.concatenate(
            [xpad_sc[pl.ds(center - pad + j * d, T), :]
             for j in range(kernel_size)], axis=-1).astype(matmul_dtype)
        pre_t = jnp.dot(xs, wt_ref[i],
                        preferred_element_type=jnp.float32) + bt_ref[i]
        pre_s = jnp.dot(xs, ws_ref[i],
                        preferred_element_type=jnp.float32) + bs_ref[i]
        if has_g:
            # cond_layer folded in; its bias is pre-folded into bt/bs.
            pre_t = pre_t + jnp.dot(g_m, wct_ref[i],
                                    preferred_element_type=jnp.float32)
            pre_s = pre_s + jnp.dot(g_m, wcs_ref[i],
                                    preferred_element_type=jnp.float32)

        # fused_add_tanh_sigmoid_multiply (elementwise math kept in f32).
        acts = jnp.tanh(pre_t) * jax.lax.logistic(pre_s)              # (T, H)
        # TODO(synk): nn.Dropout(p_dropout) is identity here (p_dropout=0 / eval).
        acts_m = acts.astype(matmul_dtype)

        skip = jnp.dot(acts_m, wskip_ref[i],
                       preferred_element_type=jnp.float32) + bskip_ref[i]
        out_sc[...] = out_sc[...] + skip
        if i < n_layers - 1:
            res = jnp.dot(acts_m, wres_ref[i],
                          preferred_element_type=jnp.float32) + bres_ref[i]
            x_new = (xpad_sc[pl.ds(center, T), :] + res) * mask
            xpad_sc[pl.ds(center, T), :] = x_new

    o_ref[...] = (out_sc[...] * mask).astype(o_ref.dtype)


# ------------------------------ WN forward ---------------------------------

def wn_forward(params, x, x_mask, g=None, *, hidden_channels, kernel_size,
               dilation_rate, n_layers, gin_channels=0,
               matmul_dtype=jnp.float32):
    """x: (B, H, T), x_mask: (B, 1, T), g: (B, gin, T) or None -> (B, H, T)."""
    B, H, T = x.shape
    assert H == hidden_channels
    K, L = kernel_size, n_layers
    has_g = g is not None

    dilations = tuple(dilation_rate ** i for i in range(L))
    pads = tuple(int((K * d - d) / 2) for d in dilations)
    max_pad = max(pads)
    center = _round_up(max_pad, 8)                       # sublane-aligned center
    Tpad = _round_up(center + T + max_pad, 8)

    xt = jnp.transpose(x, (0, 2, 1))                                   # (B, T, H)
    mask_t = jnp.transpose(x_mask, (0, 2, 1)).astype(jnp.float32)      # (B, T, 1)

    # ---- one-time wrapper-side weight repacking (lane-aligned splits) ----
    wt_l, ws_l, bt_l, bs_l = [], [], [], []
    wres_l, bres_l, wskip_l, bskip_l = [], [], [], []
    wct_l, wcs_l = [], []
    if has_g:
        w_cond = jnp.transpose(params["cond_w"][:, :, 0])              # (gin, 2HL)
        b_cond = params["cond_b"]
    for i in range(L):
        # dilated conv weight (2H, H, K) -> (K*H, 2H), split into tanh/sigmoid.
        w = jnp.transpose(params["in_w"][i], (2, 1, 0)).reshape(K * H, 2 * H)
        wt_l.append(w[:, :H])
        ws_l.append(w[:, H:])
        b = params["in_b"][i]
        bt_i, bs_i = b[:H], b[H:]
        if has_g:
            off = 2 * H * i
            wct_l.append(w_cond[:, off:off + H])
            wcs_l.append(w_cond[:, off + H:off + 2 * H])
            bt_i = bt_i + b_cond[off:off + H]
            bs_i = bs_i + b_cond[off + H:off + 2 * H]
        bt_l.append(bt_i.reshape(1, H))
        bs_l.append(bs_i.reshape(1, H))
        # res/skip 1x1 conv weight (Crs, H, 1) -> (H, Crs), split res/skip.
        m = jnp.transpose(params["rs_w"][i][:, :, 0])
        br = params["rs_b"][i]
        if i < L - 1:
            wres_l.append(m[:, :H]); wskip_l.append(m[:, H:])
            bres_l.append(br[:H].reshape(1, H)); bskip_l.append(br[H:].reshape(1, H))
        else:
            wres_l.append(jnp.zeros((H, H), m.dtype)); wskip_l.append(m)
            bres_l.append(jnp.zeros((1, H), br.dtype)); bskip_l.append(br.reshape(1, H))

    wt = jnp.stack(wt_l).astype(matmul_dtype)            # (L, K*H, H)
    ws = jnp.stack(ws_l).astype(matmul_dtype)            # (L, K*H, H)
    bt = jnp.stack(bt_l).astype(jnp.float32)             # (L, 1, H)
    bs = jnp.stack(bs_l).astype(jnp.float32)             # (L, 1, H)
    wres = jnp.stack(wres_l).astype(matmul_dtype)        # (L, H, H)
    bres = jnp.stack(bres_l).astype(jnp.float32)         # (L, 1, H)
    wskip = jnp.stack(wskip_l).astype(matmul_dtype)      # (L, H, H)
    bskip = jnp.stack(bskip_l).astype(jnp.float32)       # (L, 1, H)

    def _bspec(sh):                                      # whole-array weight spec
        return pl.BlockSpec(sh, lambda b: (0, 0, 0))

    inputs = [xt, mask_t]
    in_specs = [pl.BlockSpec((None, T, H), lambda b: (b, 0, 0)),
                pl.BlockSpec((None, T, 1), lambda b: (b, 0, 0))]
    if has_g:
        G = gin_channels
        gt = jnp.transpose(g, (0, 2, 1)).astype(matmul_dtype)          # (B, T, G)
        wct = jnp.stack(wct_l).astype(matmul_dtype)      # (L, G, H)
        wcs = jnp.stack(wcs_l).astype(matmul_dtype)      # (L, G, H)
        inputs.append(gt)
        in_specs.append(pl.BlockSpec((None, T, G), lambda b: (b, 0, 0)))
    inputs += [wt, ws, bt, bs]
    in_specs += [_bspec(wt.shape), _bspec(ws.shape), _bspec(bt.shape), _bspec(bs.shape)]
    if has_g:
        inputs += [wct, wcs]
        in_specs += [_bspec(wct.shape), _bspec(wcs.shape)]
    inputs += [wres, bres, wskip, bskip]
    in_specs += [_bspec(wres.shape), _bspec(bres.shape),
                 _bspec(wskip.shape), _bspec(bskip.shape)]

    kern = functools.partial(
        _wn_fused_kernel, kernel_size=K, dilations=dilations, pads=pads,
        center=center, T=T, H=H, has_g=has_g, matmul_dtype=matmul_dtype)

    out = pl.pallas_call(
        kern,
        out_shape=jax.ShapeDtypeStruct((B, T, H), x.dtype),
        grid=(B,),
        in_specs=in_specs,
        out_specs=pl.BlockSpec((None, T, H), lambda b: (b, 0, 0)),
        scratch_shapes=[pltpu.VMEM((Tpad, H), jnp.float32),   # padded x (halo)
                        pltpu.VMEM((T, H), jnp.float32)],     # f32 skip accumulator
        compiler_params=pltpu.CompilerParams(dimension_semantics=("parallel",)),
    )(*inputs)

    return jnp.transpose(out, (0, 2, 1))                 # back to (B, H, T)


# --------------------------- params / reference ----------------------------

def init_params(key, hidden_channels, kernel_size, n_layers, gin_channels):
    # weight_norm at init reproduces the original weight (g=||v||, v=weight),
    # so generating weights directly is exactly equivalent.
    H, K = hidden_channels, kernel_size
    params = {"in_w": [], "in_b": [], "rs_w": [], "rs_b": []}
    keys = jax.random.split(key, 4 * n_layers + 2)
    ki = 0
    if gin_channels:
        params["cond_w"] = 0.1 * jax.random.normal(
            keys[ki], (2 * H * n_layers, gin_channels, 1), jnp.float32); ki += 1
        params["cond_b"] = 0.1 * jax.random.normal(
            keys[ki], (2 * H * n_layers,), jnp.float32); ki += 1
    for i in range(n_layers):
        params["in_w"].append(0.1 * jax.random.normal(keys[ki], (2 * H, H, K), jnp.float32)); ki += 1
        params["in_b"].append(0.1 * jax.random.normal(keys[ki], (2 * H,), jnp.float32)); ki += 1
        crs = 2 * H if i < n_layers - 1 else H
        params["rs_w"].append(0.1 * jax.random.normal(keys[ki], (crs, H, 1), jnp.float32)); ki += 1
        params["rs_b"].append(0.1 * jax.random.normal(keys[ki], (crs,), jnp.float32)); ki += 1
    return params


def _conv1d_ref(x, w, b, dilation=1, padding=0):
    out = jax.lax.conv_general_dilated(
        x, w, window_strides=(1,), padding=[(padding, padding)],
        rhs_dilation=(dilation,), dimension_numbers=("NCH", "OIH", "NCH"))
    return out + b[None, :, None]


def wn_ref(params, x, x_mask, g=None, *, hidden_channels, kernel_size,
           dilation_rate, n_layers):
    H = hidden_channels
    output = jnp.zeros_like(x)
    mask = jnp.broadcast_to(x_mask, x.shape)
    if g is not None:
        g = _conv1d_ref(g, params["cond_w"], params["cond_b"])
    for i in range(n_layers):
        d = dilation_rate ** i
        pad = int((kernel_size * d - d) / 2)
        x_in = _conv1d_ref(x, params["in_w"][i], params["in_b"][i],
                           dilation=d, padding=pad)
        if g is not None:
            off = i * 2 * H
            g_l = g[:, off:off + 2 * H, :]
        else:
            g_l = jnp.zeros_like(x_in)
        in_act = x_in + g_l
        acts = jnp.tanh(in_act[:, :H, :]) * jax.nn.sigmoid(in_act[:, H:, :])
        rs = _conv1d_ref(acts, params["rs_w"][i], params["rs_b"][i])
        if i < n_layers - 1:
            x = (x + rs[:, :H, :]) * mask
            output = output + rs[:, H:, :]
        else:
            output = output + rs
    return output * mask


# --------------------------------- main -------------------------------------

if __name__ == "__main__":
    hidden_channels, kernel_size, dilation_rate, n_layers, gin_channels = 32, 3, 2, 3, 8
    B, T = 2, 64

    key = jax.random.PRNGKey(0)
    kp, kx, kg = jax.random.split(key, 3)
    params = init_params(kp, hidden_channels, kernel_size, n_layers, gin_channels)

    x = jax.random.normal(kx, (B, hidden_channels, T), jnp.float32)    # NCT like PyTorch
    g = jax.random.normal(kg, (B, gin_channels, T), jnp.float32)
    lengths = jnp.array([T, T - 11])
    x_mask = (jnp.arange(T)[None, None, :] < lengths[:, None, None]).astype(jnp.float32)

    common = dict(hidden_channels=hidden_channels, kernel_size=kernel_size,
                  dilation_rate=dilation_rate, n_layers=n_layers)

    ref = wn_ref(params, x, x_mask, g, **common)
    ref_nog = wn_ref(params, x, x_mask, None, **common)

    # f32 matmuls, with conditioning
    out = jax.block_until_ready(
        wn_forward(params, x, x_mask, g, gin_channels=gin_channels, **common))
    np.testing.assert_allclose(np.asarray(out), np.asarray(ref), rtol=1e-2, atol=1e-2)

    # specialized g=None path (no zero conditioning tensor materialized)
    out_nog = jax.block_until_ready(
        wn_forward(params, x, x_mask, None, gin_channels=0, **common))
    np.testing.assert_allclose(np.asarray(out_nog), np.asarray(ref_nog),
                               rtol=1e-2, atol=1e-2)

    # bf16 matmul operands (f32 MXU accumulation, f32 elementwise/residual state)
    out_bf16 = jax.block_until_ready(
        wn_forward(params, x, x_mask, g, gin_channels=gin_channels,
                   matmul_dtype=jnp.bfloat16, **common))
    np.testing.assert_allclose(np.asarray(out_bf16), np.asarray(ref),
                               rtol=1e-1, atol=1e-1)

    print("KERNEL_OK")
</pallas_src>

<mosaic_0001>
module attributes {stable_mosaic.version = 11 : i64} {
  func.func @_wn_fused_kernel(%arg0: i32, %arg1: memref<1x64x32xf32, #tpu.memory_space<vmem>>, %arg2: memref<1x64x1xf32, #tpu.memory_space<vmem>>, %arg3: memref<1x64x8xf32, #tpu.memory_space<vmem>>, %arg4: memref<3x96x32xf32, #tpu.memory_space<vmem>>, %arg5: memref<3x96x32xf32, #tpu.memory_space<vmem>>, %arg6: memref<3x1x32xf32, #tpu.memory_space<vmem>>, %arg7: memref<3x1x32xf32, #tpu.memory_space<vmem>>, %arg8: memref<3x8x32xf32, #tpu.memory_space<vmem>>, %arg9: memref<3x8x32xf32, #tpu.memory_space<vmem>>, %arg10: memref<3x32x32xf32, #tpu.memory_space<vmem>>, %arg11: memref<3x1x32xf32, #tpu.memory_space<vmem>>, %arg12: memref<3x32x32xf32, #tpu.memory_space<vmem>>, %arg13: memref<3x1x32xf32, #tpu.memory_space<vmem>>, %arg14: memref<1x64x32xf32, #tpu.memory_space<vmem>>, %arg15: memref<80x32xf32, #tpu.memory_space<vmem>>, %arg16: memref<64x32xf32, #tpu.memory_space<vmem>>) attributes {dimension_semantics = [#tpu.dimension_semantics<parallel>], iteration_bounds = array<i64: 2>, scalar_prefetch = 0 : i64, scratch_operands = 2 : i64, tpu.core_type = #tpu.core_type<tc>, window_params = [{transform_indices = @transform_0, window_bounds = array<i64: 1, 64, 32>}, {transform_indices = @transform_1, window_bounds = array<i64: 1, 64, 1>}, {transform_indices = @transform_2, window_bounds = array<i64: 1, 64, 8>}, {pipeline_mode = #tpu.pipeline_mode<synchronous>, transform_indices = @transform_3, window_bounds = array<i64: 3, 96, 32>}, {pipeline_mode = #tpu.pipeline_mode<synchronous>, transform_indices = @transform_4, window_bounds = array<i64: 3, 96, 32>}, {pipeline_mode = #tpu.pipeline_mode<synchronous>, transform_indices = @transform_5, window_bounds = array<i64: 3, 1, 32>}, {pipeline_mode = #tpu.pipeline_mode<synchronous>, transform_indices = @transform_6, window_bounds = array<i64: 3, 1, 32>}, {pipeline_mode = #tpu.pipeline_mode<synchronous>, transform_indices = @transform_7, window_bounds = array<i64: 3, 8, 32>}, {pipeline_mode = #tpu.pipeline_mode<synchronous>, transform_indices = @transform_8, window_bounds = array<i64: 3, 8, 32>}, {pipeline_mode = #tpu.pipeline_mode<synchronous>, transform_indices = @transform_9, window_bounds = array<i64: 3, 32, 32>}, {pipeline_mode = #tpu.pipeline_mode<synchronous>, transform_indices = @transform_10, window_bounds = array<i64: 3, 1, 32>}, {pipeline_mode = #tpu.pipeline_mode<synchronous>, transform_indices = @transform_11, window_bounds = array<i64: 3, 32, 32>}, {pipeline_mode = #tpu.pipeline_mode<synchronous>, transform_indices = @transform_12, window_bounds = array<i64: 3, 1, 32>}, {transform_indices = @transform_13, window_bounds = array<i64: 1, 64, 32>}]} {
    %c0 = arith.constant 0 : index
    %c0_0 = arith.constant 0 : index
    %c0_1 = arith.constant 0 : index
    %0 = vector.load %arg2[%c0, %c0_0, %c0_1] : memref<1x64x1xf32, #tpu.memory_space<vmem>>, vector<1x64x1xf32>
    %1 = vector.shape_cast %0 : vector<1x64x1xf32> to vector<64x1xf32>
    %cst = arith.constant 0.000000e+00 : f32
    %2 = vector.broadcast %cst : f32 to vector<80x32xf32>
    %c0_2 = arith.constant 0 : index
    %c0_3 = arith.constant 0 : index
    %3 = vector.load %arg15[%c0_2, %c0_3] : memref<80x32xf32, #tpu.memory_space<vmem>>, vector<80x32xf32>
    tpu.vector_store %arg15[%c0_2, %c0_3], %2 {strides = array<i32>} : memref<80x32xf32, #tpu.memory_space<vmem>>, vector<80x32xf32>,
    %c0_4 = arith.constant 0 : index
    %c0_5 = arith.constant 0 : index
    %c0_6 = arith.constant 0 : index
    %4 = vector.load %arg1[%c0_4, %c0_5, %c0_6] : memref<1x64x32xf32, #tpu.memory_space<vmem>>, vector<1x64x32xf32>
    %5 = vector.shape_cast %4 : vector<1x64x32xf32> to vector<64x32xf32>
    %c8 = arith.constant 8 : index
    %c0_7 = arith.constant 0 : index
    %6 = vector.load %arg15[%c8, %c0_7] : memref<80x32xf32, #tpu.memory_space<vmem>>, vector<64x32xf32>
    tpu.vector_store %arg15[%c8, %c0_7], %5 {strides = array<i32>} : memref<80x32xf32, #tpu.memory_space<vmem>>, vector<64x32xf32>,
    %cst_8 = arith.constant 0.000000e+00 : f32
    %7 = vector.broadcast %cst_8 : f32 to vector<64x32xf32>
    %c0_9 = arith.constant 0 : index
    %c0_10 = arith.constant 0 : index
    %8 = vector.load %arg16[%c0_9, %c0_10] : memref<64x32xf32, #tpu.memory_space<vmem>>, vector<64x32xf32>
    tpu.vector_store %arg16[%c0_9, %c0_10], %7 {strides = array<i32>} : memref<64x32xf32, #tpu.memory_space<vmem>>, vector<64x32xf32>,
    %c0_11 = arith.constant 0 : index
    %c0_12 = arith.constant 0 : index
    %c0_13 = arith.constant 0 : index
    %9 = vector.load %arg3[%c0_11, %c0_12, %c0_13] : memref<1x64x8xf32, #tpu.memory_space<vmem>>, vector<1x64x8xf32>
    %10 = vector.shape_cast %9 : vector<1x64x8xf32> to vector<64x8xf32>
    %c7 = arith.constant 7 : index
    %c0_14 = arith.constant 0 : index
    %11 = vector.load %arg15[%c7, %c0_14] : memref<80x32xf32, #tpu.memory_space<vmem>>, vector<64x32xf32>
    %c8_15 = arith.constant 8 : index
    %c0_16 = arith.constant 0 : index
    %12 = vector.load %arg15[%c8_15, %c0_16] : memref<80x32xf32, #tpu.memory_space<vmem>>, vector<64x32xf32>
    %c9 = arith.constant 9 : index
    %c0_17 = arith.constant 0 : index
    %13 = vector.load %arg15[%c9, %c0_17] : memref<80x32xf32, #tpu.memory_space<vmem>>, vector<64x32xf32>
    %14 = tpu.concatenate %11, %12, %13 in 1 : vector<64x32xf32>, vector<64x32xf32>, vector<64x32xf32> -> vector<64x96xf32>
    %c0_18 = arith.constant 0 : index
    %c0_19 = arith.constant 0 : index
    %c0_20 = arith.constant 0 : index
    %15 = vector.load %arg4[%c0_18, %c0_19, %c0_20] : memref<3x96x32xf32, #tpu.memory_space<vmem>>, vector<1x96x32xf32>
    %16 = vector.shape_cast %15 : vector<1x96x32xf32> to vector<96x32xf32>
    %cst_21 = arith.constant dense<0.000000e+00> : vector<64x32xf32>
    %17 = tpu.matmul %14, %16, %cst_21 {dimension_numbers = #tpu.dot_dimension_numbers<[1], [0], [0], [1], [0, 0, 1, 1], [], []>} : vector<64x96xf32>, vector<96x32xf32>, vector<64x32xf32> -> vector<64x32xf32>
    %c0_22 = arith.constant 0 : index
    %c0_23 = arith.constant 0 : index
    %c0_24 = arith.constant 0 : index
    %18 = vector.load %arg6[%c0_22, %c0_23, %c0_24] : memref<3x1x32xf32, #tpu.memory_space<vmem>>, vector<1x1x32xf32>
    %19 = vector.shape_cast %18 : vector<1x1x32xf32> to vector<1x32xf32>
    %20 = vector.broadcast %19 : vector<1x32xf32> to vector<64x32xf32>
    %21 = arith.addf %17, %20 : vector<64x32xf32>
    %c0_25 = arith.constant 0 : index
    %c0_26 = arith.constant 0 : index
    %c0_27 = arith.constant 0 : index
    %22 = vector.load %arg5[%c0_25, %c0_26, %c0_27] : memref<3x96x32xf32, #tpu.memory_space<vmem>>, vector<1x96x32xf32>
    %23 = vector.shape_cast %22 : vector<1x96x32xf32> to vector<96x32xf32>
    %cst_28 = arith.constant dense<0.000000e+00> : vector<64x32xf32>
    %24 = tpu.matmul %14, %23, %cst_28 {dimension_numbers = #tpu.dot_dimension_numbers<[1], [0], [0], [1], [0, 0, 1, 1], [], []>} : vector<64x96xf32>, vector<96x32xf32>, vector<64x32xf32> -> vector<64x32xf32>
    %c0_29 = arith.constant 0 : index
    %c0_30 = arith.constant 0 : index
    %c0_31 = arith.constant 0 : index
    %25 = vector.load %arg7[%c0_29, %c0_30, %c0_31] : memref<3x1x32xf32, #tpu.memory_space<vmem>>, vector<1x1x32xf32>
    %26 = vector.shape_cast %25 : vector<1x1x32xf32> to vector<1x32xf32>
    %27 = vector.broadcast %26 : vector<1x32xf32> to vector<64x32xf32>
    %28 = arith.addf %24, %27 : vector<64x32xf32>
    %c0_32 = arith.constant 0 : index
    %c0_33 = arith.constant 0 : index
    %c0_34 = arith.constant 0 : index
    %29 = vector.load %arg8[%c0_32, %c0_33, %c0_34] : memref<3x8x32xf32, #tpu.memory_space<vmem>>, vector<1x8x32xf32>
    %30 = vector.shape_cast %29 : vector<1x8x32xf32> to vector<8x32xf32>
    %cst_35 = arith.constant dense<0.000000e+00> : vector<64x32xf32>
    %31 = tpu.matmul %10, %30, %cst_35 {dimension_numbers = #tpu.dot_dimension_numbers<[1], [0], [0], [1], [0, 0, 1, 1], [], []>} : vector<64x8xf32>, vector<8x32xf32>, vector<64x32xf32> -> vector<64x32xf32>
    %32 = arith.addf %21, %31 : vector<64x32xf32>
    %c0_36 = arith.constant 0 : index
    %c0_37 = arith.constant 0 : index
    %c0_38 = arith.constant 0 : index
    %33 = vector.load %arg9[%c0_36, %c0_37, %c0_38] : memref<3x8x32xf32, #tpu.memory_space<vmem>>, vector<1x8x32xf32>
    %34 = vector.shape_cast %33 : vector<1x8x32xf32> to vector<8x32xf32>
    %cst_39 = arith.constant dense<0.000000e+00> : vector<64x32xf32>
    %35 = tpu.matmul %10, %34, %cst_39 {dimension_numbers = #tpu.dot_dimension_numbers<[1], [0], [0], [1], [0, 0, 1, 1], [], []>} : vector<64x8xf32>, vector<8x32xf32>, vector<64x32xf32> -> vector<64x32xf32>
    %36 = arith.addf %28, %35 : vector<64x32xf32>
    %37 = math.tanh %32 : vector<64x32xf32>
    %38 = arith.negf %36 : vector<64x32xf32>
    %39 = math.exp %38 : vector<64x32xf32>
    %cst_40 = arith.constant 1.000000e+00 : f32
    %40 = vector.broadcast %cst_40 : f32 to vector<64x32xf32>
    %41 = arith.addf %40, %39 : vector<64x32xf32>
    %42 = arith.divf %40, %41 : vector<64x32xf32>
    %43 = arith.mulf %37, %42 : vector<64x32xf32>
    %c0_41 = arith.constant 0 : index
    %c0_42 = arith.constant 0 : index
    %c0_43 = arith.constant 0 : index
    %44 = vector.load %arg12[%c0_41, %c0_42, %c0_43] : memref<3x32x32xf32, #tpu.memory_space<vmem>>, vector<1x32x32xf32>
    %45 = vector.shape_cast %44 : vector<1x32x32xf32> to vector<32x32xf32>
    %cst_44 = arith.constant dense<0.000000e+00> : vector<64x32xf32>
    %46 = tpu.matmul %43, %45, %cst_44 {dimension_numbers = #tpu.dot_dimension_numbers<[1], [0], [0], [1], [0, 0, 1, 1], [], []>} : vector<64x32xf32>, vector<32x32xf32>, vector<64x32xf32> -> vector<64x32xf32>
    %c0_45 = arith.constant 0 : index
    %c0_46 = arith.constant 0 : index
    %c0_47 = arith.constant 0 : index
    %47 = vector.load %arg13[%c0_45, %c0_46, %c0_47] : memref<3x1x32xf32, #tpu.memory_space<vmem>>, vector<1x1x32xf32>
    %48 = vector.shape_cast %47 : vector<1x1x32xf32> to vector<1x32xf32>
    %49 = vector.broadcast %48 : vector<1x32xf32> to vector<64x32xf32>
    %50 = arith.addf %46, %49 : vector<64x32xf32>
    %c0_48 = arith.constant 0 : index
    %c0_49 = arith.constant 0 : index
    %51 = vector.load %arg16[%c0_48, %c0_49] : memref<64x32xf32, #tpu.memory_space<vmem>>, vector<64x32xf32>
    %52 = arith.addf %51, %50 : vector<64x32xf32>
    %c0_50 = arith.constant 0 : index
    %c0_51 = arith.constant 0 : index
    %53 = vector.load %arg16[%c0_50, %c0_51] : memref<64x32xf32, #tpu.memory_space<vmem>>, vector<64x32xf32>
    tpu.vector_store %arg16[%c0_50, %c0_51], %52 {strides = array<i32>} : memref<64x32xf32, #tpu.memory_space<vmem>>, vector<64x32xf32>,
    %c0_52 = arith.constant 0 : index
    %c0_53 = arith.constant 0 : index
    %c0_54 = arith.constant 0 : index
    %54 = vector.load %arg10[%c0_52, %c0_53, %c0_54] : memref<3x32x32xf32, #tpu.memory_space<vmem>>, vector<1x32x32xf32>
    %55 = vector.shape_cast %54 : vector<1x32x32xf32> to vector<32x32xf32>
    %cst_55 = arith.constant dense<0.000000e+00> : vector<64x32xf32>
    %56 = tpu.matmul %43, %55, %cst_55 {dimension_numbers = #tpu.dot_dimension_numbers<[1], [0], [0], [1], [0, 0, 1, 1], [], []>} : vector<64x32xf32>, vector<32x32xf32>, vector<64x32xf32> -> vector<64x32xf32>
    %c0_56 = arith.constant 0 : index
    %c0_57 = arith.constant 0 : index
    %c0_58 = arith.constant 0 : index
    %57 = vector.load %arg11[%c0_56, %c0_57, %c0_58] : memref<3x1x32xf32, #tpu.memory_space<vmem>>, vector<1x1x32xf32>
    %58 = vector.shape_cast %57 : vector<1x1x32xf32> to vector<1x32xf32>
    %59 = vector.broadcast %58 : vector<1x32xf32> to vector<64x32xf32>
    %60 = arith.addf %56, %59 : vector<64x32xf32>
    %c8_59 = arith.constant 8 : index
    %c0_60 = arith.constant 0 : index
    %61 = vector.load %arg15[%c8_59, %c0_60] : memref<80x32xf32, #tpu.memory_space<vmem>>, vector<64x32xf32>
    %62 = arith.addf %61, %60 : vector<64x32xf32>
    %63 = vector.broadcast %1 : vector<64x1xf32> to vector<64x32xf32>
    %64 = arith.mulf %62, %63 : vector<64x32xf32>
    %c8_61 = arith.constant 8 : index
    %c0_62 = arith.constant 0 : index
    %65 = vector.load %arg15[%c8_61, %c0_62] : memref<80x32xf32, #tpu.memory_space<vmem>>, vector<64x32xf32>
    tpu.vector_store %arg15[%c8_61, %c0_62], %64 {strides = array<i32>} : memref<80x32xf32, #tpu.memory_space<vmem>>, vector<64x32xf32>,
    %c6 = arith.constant 6 : index
    %c0_63 = arith.constant 0 : index
    %66 = vector.load %arg15[%c6, %c0_63] : memref<80x32xf32, #tpu.memory_space<vmem>>, vector<64x32xf32>
    %c8_64 = arith.constant 8 : index
    %c0_65 = arith.constant 0 : index
    %67 = vector.load %arg15[%c8_64, %c0_65] : memref<80x32xf32, #tpu.memory_space<vmem>>, vector<64x32xf32>
    %c10 = arith.constant 10 : index
    %c0_66 = arith.constant 0 : index
    %68 = vector.load %arg15[%c10, %c0_66] : memref<80x32xf32, #tpu.memory_space<vmem>>, vector<64x32xf32>
    %69 = tpu.concatenate %66, %67, %68 in 1 : vector<64x32xf32>, vector<64x32xf32>, vector<64x32xf32> -> vector<64x96xf32>
    %c1 = arith.constant 1 : index
    %c0_67 = arith.constant 0 : index
    %c0_68 = arith.constant 0 : index
    %70 = vector.load %arg4[%c1, %c0_67, %c0_68] : memref<3x96x32xf32, #tpu.memory_space<vmem>>, vector<1x96x32xf32>
    %71 = vector.shape_cast %70 : vector<1x96x32xf32> to vector<96x32xf32>
    %cst_69 = arith.constant dense<0.000000e+00> : vector<64x32xf32>
    %72 = tpu.matmul %69, %71, %cst_69 {dimension_numbers = #tpu.dot_dimension_numbers<[1], [0], [0], [1], [0, 0, 1, 1], [], []>} : vector<64x96xf32>, vector<96x32xf32>, vector<64x32xf32> -> vector<64x32xf32>
    %c1_70 = arith.constant 1 : index
    %c0_71 = arith.constant 0 : index
    %c0_72 = arith.constant 0 : index
    %73 = vector.load %arg6[%c1_70, %c0_71, %c0_72] : memref<3x1x32xf32, #tpu.memory_space<vmem>>, vector<1x1x32xf32>
    %74 = vector.shape_cast %73 : vector<1x1x32xf32> to vector<1x32xf32>
    %75 = vector.broadcast %74 : vector<1x32xf32> to vector<64x32xf32>
    %76 = arith.addf %72, %75 : vector<64x32xf32>
    %c1_73 = arith.constant 1 : index
    %c0_74 = arith.constant 0 : index
    %c0_75 = arith.constant 0 : index
    %77 = vector.load %arg5[%c1_73, %c0_74, %c0_75] : memref<3x96x32xf32, #tpu.memory_space<vmem>>, vector<1x96x32xf32>
    %78 = vector.shape_cast %77 : vector<1x96x32xf32> to vector<96x32xf32>
    %cst_76 = arith.constant dense<0.000000e+00> : vector<64x32xf32>
    %79 = tpu.matmul %69, %78, %cst_76 {dimension_numbers = #tpu.dot_dimension_numbers<[1], [0], [0], [1], [0, 0, 1, 1], [], []>} : vector<64x96xf32>, vector<96x32xf32>, vector<64x32xf32> -> vector<64x32xf32>
    %c1_77 = arith.constant 1 : index
    %c0_78 = arith.constant 0 : index
    %c0_79 = arith.constant 0 : index
    %80 = vector.load %arg7[%c1_77, %c0_78, %c0_79] : memref<3x1x32xf32, #tpu.memory_space<vmem>>, vector<1x1x32xf32>
    %81 = vector.shape_cast %80 : vector<1x1x32xf32> to vector<1x32xf32>
    %82 = vector.broadcast %81 : vector<1x32xf32> to vector<64x32xf32>
    %83 = arith.addf %79, %82 : vector<64x32xf32>
    %c1_80 = arith.constant 1 : index
    %c0_81 = arith.constant 0 : index
    %c0_82 = arith.constant 0 : index
    %84 = vector.load %arg8[%c1_80, %c0_81, %c0_82] : memref<3x8x32xf32, #tpu.memory_space<vmem>>, vector<1x8x32xf32>
    %85 = vector.shape_cast %84 : vector<1x8x32xf32> to vector<8x32xf32>
    %cst_83 = arith.constant dense<0.000000e+00> : vector<64x32xf32>
    %86 = tpu.matmul %10, %85, %cst_83 {dimension_numbers = #tpu.dot_dimension_numbers<[1], [0], [0], [1], [0, 0, 1, 1], [], []>} : vector<64x8xf32>, vector<8x32xf32>, vector<64x32xf32> -> vector<64x32xf32>
    %87 = arith.addf %76, %86 : vector<64x32xf32>
    %c1_84 = arith.constant 1 : index
    %c0_85 = arith.constant 0 : index
    %c0_86 = arith.constant 0 : index
    %88 = vector.load %arg9[%c1_84, %c0_85, %c0_86] : memref<3x8x32xf32, #tpu.memory_space<vmem>>, vector<1x8x32xf32>
    %89 = vector.shape_cast %88 : vector<1x8x32xf32> to vector<8x32xf32>
    %cst_87 = arith.constant dense<0.000000e+00> : vector<64x32xf32>
    %90 = tpu.matmul %10, %89, %cst_87 {dimension_numbers = #tpu.dot_dimension_numbers<[1], [0], [0], [1], [0, 0, 1, 1], [], []>} : vector<64x8xf32>, vector<8x32xf32>, vector<64x32xf32> -> vector<64x32xf32>
    %91 = arith.addf %83, %90 : vector<64x32xf32>
    %92 = math.tanh %87 : vector<64x32xf32>
    %93 = arith.negf %91 : vector<64x32xf32>
    %94 = math.exp %93 : vector<64x32xf32>
    %cst_88 = arith.constant 1.000000e+00 : f32
    %95 = vector.broadcast %cst_88 : f32 to vector<64x32xf32>
    %96 = arith.addf %95, %94 : vector<64x32xf32>
    %97 = arith.divf %95, %96 : vector<64x32xf32>
    %98 = arith.mulf %92, %97 : vector<64x32xf32>
    %c1_89 = arith.constant 1 : index
    %c0_90 = arith.constant 0 : index
    %c0_91 = arith.constant 0 : index
    %99 = vector.load %arg12[%c1_89, %c0_90, %c0_91] : memref<3x32x32xf32, #tpu.memory_space<vmem>>, vector<1x32x32xf32>
    %100 = vector.shape_cast %99 : vector<1x32x32xf32> to vector<32x32xf32>
    %cst_92 = arith.constant dense<0.000000e+00> : vector<64x32xf32>
    %101 = tpu.matmul %98, %100, %cst_92 {dimension_numbers = #tpu.dot_dimension_numbers<[1], [0], [0], [1], [0, 0, 1, 1], [], []>} : vector<64x32xf32>, vector<32x32xf32>, vector<64x32xf32> -> vector<64x32xf32>
    %c1_93 = arith.constant 1 : index
    %c0_94 = arith.constant 0 : index
    %c0_95 = arith.constant 0 : index
    %102 = vector.load %arg13[%c1_93, %c0_94, %c0_95] : memref<3x1x32xf32, #tpu.memory_space<vmem>>, vector<1x1x32xf32>
    %103 = vector.shape_cast %102 : vector<1x1x32xf32> to vector<1x32xf32>
    %104 = vector.broadcast %103 : vector<1x32xf32> to vector<64x32xf32>
    %105 = arith.addf %101, %104 : vector<64x32xf32>
    %c0_96 = arith.constant 0 : index
    %c0_97 = arith.constant 0 : index
    %106 = vector.load %arg16[%c0_96, %c0_97] : memref<64x32xf32, #tpu.memory_space<vmem>>, vector<64x32xf32>
    %107 = arith.addf %106, %105 : vector<64x32xf32>
    %c0_98 = arith.constant 0 : index
    %c0_99 = arith.constant 0 : index
    %108 = vector.load %arg16[%c0_98, %c0_99] : memref<64x32xf32, #tpu.memory_space<vmem>>, vector<64x32xf32>
    tpu.vector_store %arg16[%c0_98, %c0_99], %107 {strides = array<i32>} : memref<64x32xf32, #tpu.memory_space<vmem>>, vector<64x32xf32>,
    %c1_100 = arith.constant 1 : index
    %c0_101 = arith.constant 0 : index
    %c0_102 = arith.constant 0 : index
    %109 = vector.load %arg10[%c1_100, %c0_101, %c0_102] : memref<3x32x32xf32, #tpu.memory_space<vmem>>, vector<1x32x32xf32>
    %110 = vector.shape_cast %109 : vector<1x32x32xf32> to vector<32x32xf32>
    %cst_103 = arith.constant dense<0.000000e+00> : vector<64x32xf32>
    %111 = tpu.matmul %98, %110, %cst_103 {dimension_numbers = #tpu.dot_dimension_numbers<[1], [0], [0], [1], [0, 0, 1, 1], [], []>} : vector<64x32xf32>, vector<32x32xf32>, vector<64x32xf32> -> vector<64x32xf32>
    %c1_104 = arith.constant 1 : index
    %c0_105 = arith.constant 0 : index
    %c0_106 = arith.constant 0 : index
    %112 = vector.load %arg11[%c1_104, %c0_105, %c0_106] : memref<3x1x32xf32, #tpu.memory_space<vmem>>, vector<1x1x32xf32>
    %113 = vector.shape_cast %112 : vector<1x1x32xf32> to vector<1x32xf32>
    %114 = vector.broadcast %113 : vector<1x32xf32> to vector<64x32xf32>
    %115 = arith.addf %111, %114 : vector<64x32xf32>
    %c8_107 = arith.constant 8 : index
    %c0_108 = arith.constant 0 : index
    %116 = vector.load %arg15[%c8_107, %c0_108] : memref<80x32xf32, #tpu.memory_space<vmem>>, vector<64x32xf32>
    %117 = arith.addf %116, %115 : vector<64x32xf32>
    %118 = vector.broadcast %1 : vector<64x1xf32> to vector<64x32xf32>
    %119 = arith.mulf %117, %118 : vector<64x32xf32>
    %c8_109 = arith.constant 8 : index
    %c0_110 = arith.constant 0 : index
    %120 = vector.load %arg15[%c8_109, %c0_110] : memref<80x32xf32, #tpu.memory_space<vmem>>, vector<64x32xf32>
    tpu.vector_store %arg15[%c8_109, %c0_110], %119 {strides = array<i32>} : memref<80x32xf32, #tpu.memory_space<vmem>>, vector<64x32xf32>,
    %c4 = arith.constant 4 : index
    %c0_111 = arith.constant 0 : index
    %121 = vector.load %arg15[%c4, %c0_111] : memref<80x32xf32, #tpu.memory_space<vmem>>, vector<64x32xf32>
    %c8_112 = arith.constant 8 : index
    %c0_113 = arith.constant 0 : index
    %122 = vector.load %arg15[%c8_112, %c0_113] : memref<80x32xf32, #tpu.memory_space<vmem>>, vector<64x32xf32>
    %c12 = arith.constant 12 : index
    %c0_114 = arith.constant 0 : index
    %123 = vector.load %arg15[%c12, %c0_114] : memref<80x32xf32, #tpu.memory_space<vmem>>, vector<64x32xf32>
    %124 = tpu.concatenate %121, %122, %123 in 1 : vector<64x32xf32>, vector<64x32xf32>, vector<64x32xf32> -> vector<64x96xf32>
    %c2 = arith.constant 2 : index
    %c0_115 = arith.constant 0 : index
    %c0_116 = arith.constant 0 : index
    %125 = vector.load %arg4[%c2, %c0_115, %c0_116] : memref<3x96x32xf32, #tpu.memory_space<vmem>>, vector<1x96x32xf32>
    %126 = vector.shape_cast %125 : vector<1x96x32xf32> to vector<96x32xf32>
    %cst_117 = arith.constant dense<0.000000e+00> : vector<64x32xf32>
    %127 = tpu.matmul %124, %126, %cst_117 {dimension_numbers = #tpu.dot_dimension_numbers<[1], [0], [0], [1], [0, 0, 1, 1], [], []>} : vector<64x96xf32>, vector<96x32xf32>, vector<64x32xf32> -> vector<64x32xf32>
    %c2_118 = arith.constant 2 : index
    %c0_119 = arith.constant 0 : index
    %c0_120 = arith.constant 0 : index
    %128 = vector.load %arg6[%c2_118, %c0_119, %c0_120] : memref<3x1x32xf32, #tpu.memory_space<vmem>>, vector<1x1x32xf32>
    %129 = vector.shape_cast %128 : vector<1x1x32xf32> to vector<1x32xf32>
    %130 = vector.broadcast %129 : vector<1x32xf32> to vector<64x32xf32>
    %131 = arith.addf %127, %130 : vector<64x32xf32>
    %c2_121 = arith.constant 2 : index
    %c0_122 = arith.constant 0 : index
    %c0_123 = arith.constant 0 : index
    %132 = vector.load %arg5[%c2_121, %c0_122, %c0_123] : memref<3x96x32xf32, #tpu.memory_space<vmem>>, vector<1x96x32xf32>
    %133 = vector.shape_cast %132 : vector<1x96x32xf32> to vector<96x32xf32>
    %cst_124 = arith.constant dense<0.000000e+00> : vector<64x32xf32>
    %134 = tpu.matmul %124, %133, %cst_124 {dimension_numbers = #tpu.dot_dimension_numbers<[1], [0], [0], [1], [0, 0, 1, 1], [], []>} : vector<64x96xf32>, vector<96x32xf32>, vector<64x32xf32> -> vector<64x32xf32>
    %c2_125 = arith.constant 2 : index
    %c0_126 = arith.constant 0 : index
    %c0_127 = arith.constant 0 : index
    %135 = vector.load %arg7[%c2_125, %c0_126, %c0_127] : memref<3x1x32xf32, #tpu.memory_space<vmem>>, vector<1x1x32xf32>
    %136 = vector.shape_cast %135 : vector<1x1x32xf32> to vector<1x32xf32>
    %137 = vector.broadcast %136 : vector<1x32xf32> to vector<64x32xf32>
    %138 = arith.addf %134, %137 : vector<64x32xf32>
    %c2_128 = arith.constant 2 : index
    %c0_129 = arith.constant 0 : index
    %c0_130 = arith.constant 0 : index
    %139 = vector.load %arg8[%c2_128, %c0_129, %c0_130] : memref<3x8x32xf32, #tpu.memory_space<vmem>>, vector<1x8x32xf32>
    %140 = vector.shape_cast %139 : vector<1x8x32xf32> to vector<8x32xf32>
    %cst_131 = arith.constant dense<0.000000e+00> : vector<64x32xf32>
    %141 = tpu.matmul %10, %140, %cst_131 {dimension_numbers = #tpu.dot_dimension_numbers<[1], [0], [0], [1], [0, 0, 1, 1], [], []>} : vector<64x8xf32>, vector<8x32xf32>, vector<64x32xf32> -> vector<64x32xf32>
    %142 = arith.addf %131, %141 : vector<64x32xf32>
    %c2_132 = arith.constant 2 : index
    %c0_133 = arith.constant 0 : index
    %c0_134 = arith.constant 0 : index
    %143 = vector.load %arg9[%c2_132, %c0_133, %c0_134] : memref<3x8x32xf32, #tpu.memory_space<vmem>>, vector<1x8x32xf32>
    %144 = vector.shape_cast %143 : vector<1x8x32xf32> to vector<8x32xf32>
    %cst_135 = arith.constant dense<0.000000e+00> : vector<64x32xf32>
    %145 = tpu.matmul %10, %144, %cst_135 {dimension_numbers = #tpu.dot_dimension_numbers<[1], [0], [0], [1], [0, 0, 1, 1], [], []>} : vector<64x8xf32>, vector<8x32xf32>, vector<64x32xf32> -> vector<64x32xf32>
    %146 = arith.addf %138, %145 : vector<64x32xf32>
    %147 = math.tanh %142 : vector<64x32xf32>
    %148 = arith.negf %146 : vector<64x32xf32>
    %149 = math.exp %148 : vector<64x32xf32>
    %cst_136 = arith.constant 1.000000e+00 : f32
    %150 = vector.broadcast %cst_136 : f32 to vector<64x32xf32>
    %151 = arith.addf %150, %149 : vector<64x32xf32>
    %152 = arith.divf %150, %151 : vector<64x32xf32>
    %153 = arith.mulf %147, %152 : vector<64x32xf32>
    %c2_137 = arith.constant 2 : index
    %c0_138 = arith.constant 0 : index
    %c0_139 = arith.constant 0 : index
    %154 = vector.load %arg12[%c2_137, %c0_138, %c0_139] : memref<3x32x32xf32, #tpu.memory_space<vmem>>, vector<1x32x32xf32>
    %155 = vector.shape_cast %154 : vector<1x32x32xf32> to vector<32x32xf32>
    %cst_140 = arith.constant dense<0.000000e+00> : vector<64x32xf32>
    %156 = tpu.matmul %153, %155, %cst_140 {dimension_numbers = #tpu.dot_dimension_numbers<[1], [0], [0], [1], [0, 0, 1, 1], [], []>} : vector<64x32xf32>, vector<32x32xf32>, vector<64x32xf32> -> vector<64x32xf32>
    %c2_141 = arith.constant 2 : index
    %c0_142 = arith.constant 0 : index
    %c0_143 = arith.constant 0 : index
    %157 = vector.load %arg13[%c2_141, %c0_142, %c0_143] : memref<3x1x32xf32, #tpu.memory_space<vmem>>, vector<1x1x32xf32>
    %158 = vector.shape_cast %157 : vector<1x1x32xf32> to vector<1x32xf32>
    %159 = vector.broadcast %158 : vector<1x32xf32> to vector<64x32xf32>
    %160 = arith.addf %156, %159 : vector<64x32xf32>
    %c0_144 = arith.constant 0 : index
    %c0_145 = arith.constant 0 : index
    %161 = vector.load %arg16[%c0_144, %c0_145] : memref<64x32xf32, #tpu.memory_space<vmem>>, vector<64x32xf32>
    %162 = arith.addf %161, %160 : vector<64x32xf32>
    %c0_146 = arith.constant 0 : index
    %c0_147 = arith.constant 0 : index
    %163 = vector.load %arg16[%c0_146, %c0_147] : memref<64x32xf32, #tpu.memory_space<vmem>>, vector<64x32xf32>
    tpu.vector_store %arg16[%c0_146, %c0_147], %162 {strides = array<i32>} : memref<64x32xf32, #tpu.memory_space<vmem>>, vector<64x32xf32>,
    %c0_148 = arith.constant 0 : index
    %c0_149 = arith.constant 0 : index
    %164 = vector.load %arg16[%c0_148, %c0_149] : memref<64x32xf32, #tpu.memory_space<vmem>>, vector<64x32xf32>
    %165 = vector.broadcast %1 : vector<64x1xf32> to vector<64x32xf32>
    %166 = arith.mulf %164, %165 : vector<64x32xf32>
    %c0_150 = arith.constant 0 : index
    %c0_151 = arith.constant 0 : index
    %c0_152 = arith.constant 0 : index
    %167 = vector.load %arg14[%c0_150, %c0_151, %c0_152] : memref<1x64x32xf32, #tpu.memory_space<vmem>>, vector<1x64x32xf32>
    %168 = vector.shape_cast %167 : vector<1x64x32xf32> to vector<64x32xf32>
    %169 = vector.shape_cast %166 : vector<64x32xf32> to vector<1x64x32xf32>
    tpu.vector_store %arg14[%c0_150, %c0_151, %c0_152], %169 {strides = array<i32>} : memref<1x64x32xf32, #tpu.memory_space<vmem>>, vector<1x64x32xf32>,
    return
  }
  func.func @transform_0(%arg0: i32) -> (i32, i32, i32) {
    %c0_i32 = arith.constant 0 : i32
    %c0_i32_0 = arith.constant 0 : i32
    %c0_i32_1 = arith.constant 0 : i32
    return %arg0, %c0_i32, %c0_i32_0 : i32, i32, i32
  }
  func.func @transform_1(%arg0: i32) -> (i32, i32, i32) {
    %c0_i32 = arith.constant 0 : i32
    %c0_i32_0 = arith.constant 0 : i32
    %c0_i32_1 = arith.constant 0 : i32
    return %arg0, %c0_i32, %c0_i32_0 : i32, i32, i32
  }
  func.func @transform_2(%arg0: i32) -> (i32, i32, i32) {
    %c0_i32 = arith.constant 0 : i32
    %c0_i32_0 = arith.constant 0 : i32
    %c0_i32_1 = arith.constant 0 : i32
    return %arg0, %c0_i32, %c0_i32_0 : i32, i32, i32
  }
  func.func @transform_3(%arg0: i32) -> (i32, i32, i32) {
    %c0_i32 = arith.constant 0 : i32
    %c0_i32_0 = arith.constant 0 : i32
    %c0_i32_1 = arith.constant 0 : i32
    %c0_i32_2 = arith.constant 0 : i32
    return %c0_i32, %c0_i32_0, %c0_i32_1 : i32, i32, i32
  }
  func.func @transform_4(%arg0: i32) -> (i32, i32, i32) {
    %c0_i32 = arith.constant 0 : i32
    %c0_i32_0 = arith.constant 0 : i32
    %c0_i32_1 = arith.constant 0 : i32
    %c0_i32_2 = arith.constant 0 : i32
    return %c0_i32, %c0_i32_0, %c0_i32_1 : i32, i32, i32
  }
  func.func @transform_5(%arg0: i32) -> (i32, i32, i32) {
    %c0_i32 = arith.constant 0 : i32
    %c0_i32_0 = arith.constant 0 : i32
    %c0_i32_1 = arith.constant 0 : i32
    %c0_i32_2 = arith.constant 0 : i32
    return %c0_i32, %c0_i32_0, %c0_i32_1 : i32, i32, i32
  }
  func.func @transform_6(%arg0: i32) -> (i32, i32, i32) {
    %c0_i32 = arith.constant 0 : i32
    %c0_i32_0 = arith.constant 0 : i32
    %c0_i32_1 = arith.constant 0 : i32
    %c0_i32_2 = arith.constant 0 : i32
    return %c0_i32, %c0_i32_0, %c0_i32_1 : i32, i32, i32
  }
  func.func @transform_7(%arg0: i32) -> (i32, i32, i32) {
    %c0_i32 = arith.constant 0 : i32
    %c0_i32_0 = arith.constant 0 : i32
    %c0_i32_1 = arith.constant 0 : i32
    %c0_i32_2 = arith.constant 0 : i32
    return %c0_i32, %c0_i32_0, %c0_i32_1 : i32, i32, i32
  }
  func.func @transform_8(%arg0: i32) -> (i32, i32, i32) {
    %c0_i32 = arith.constant 0 : i32
    %c0_i32_0 = arith.constant 0 : i32
    %c0_i32_1 = arith.constant 0 : i32
    %c0_i32_2 = arith.constant 0 : i32
    return %c0_i32, %c0_i32_0, %c0_i32_1 : i32, i32, i32
  }
  func.func @transform_9(%arg0: i32) -> (i32, i32, i32) {
    %c0_i32 = arith.constant 0 : i32
    %c0_i32_0 = arith.constant 0 : i32
    %c0_i32_1 = arith.constant 0 : i32
    %c0_i32_2 = arith.constant 0 : i32
    return %c0_i32, %c0_i32_0, %c0_i32_1 : i32, i32, i32
  }
  func.func @transform_10(%arg0: i32) -> (i32, i32, i32) {
    %c0_i32 = arith.constant 0 : i32
    %c0_i32_0 = arith.constant 0 : i32
    %c0_i32_1 = arith.constant 0 : i32
    %c0_i32_2 = arith.constant 0 : i32
    return %c0_i32, %c0_i32_0, %c0_i32_1 : i32, i32, i32
  }
  func.func @transform_11(%arg0: i32) -> (i32, i32, i32) {
    %c0_i32 = arith.constant 0 : i32
    %c0_i32_0 = arith.constant 0 : i32
    %c0_i32_1 = arith.constant 0 : i32
    %c0_i32_2 = arith.constant 0 : i32
    return %c0_i32, %c0_i32_0, %c0_i32_1 : i32, i32, i32
  }
  func.func @transform_12(%arg0: i32) -> (i32, i32, i32) {
    %c0_i32 = arith.constant 0 : i32
    %c0_i32_0 = arith.constant 0 : i32
    %c0_i32_1 = arith.constant 0 : i32
    %c0_i32_2 = arith.constant 0 : i32
    return %c0_i32, %c0_i32_0, %c0_i32_1 : i32, i32, i32
  }
  func.func @transform_13(%arg0: i32) -> (i32, i32, i32) {
    %c0_i32 = arith.constant 0 : i32
    %c0_i32_0 = arith.constant 0 : i32
    %c0_i32_1 = arith.constant 0 : i32
    return %arg0, %c0_i32, %c0_i32_0 : i32, i32, i32
  }
}

</mosaic_0001>

<bundles_post_ra>
// kernel: tpu_custom_call.1
= control target key start
LH: loop header
LB: loop body
LE: loop exit
PB: predicated region body
PF: predicated region fallthrough
CT: control target
= control target key end

     0   :  { %s4930_s25 = smov 0   ;;  %s5854_s0 = inlined_call_operand.vmem [shape: f32[2,64,32], index: 0, kind: input, shape index: {}]   ;;  %s5855_s1 = inlined_call_operand.vmem [shape: f32[2,64,1], index: 1, kind: input, shape index: {}]   ;;  %s5856_s2 = inlined_call_operand.vmem [shape: f32[2,64,8], index: 2, kind: input, shape index: {}]   ;;  %s5857_s3 = inlined_call_operand.vmem [shape: f32[3,96,32], index: 3, kind: input, shape index: {}]   ;;  %s5858_s4 = inlined_call_operand.vmem [shape: f32[3,96,32], index: 4, kind: input, shape index: {}]   ;;  %s5859_s5 = inlined_call_operand.vmem [shape: f32[3,1,32], index: 5, kind: input, shape index: {}]   ;;  %s5860_s6 = inlined_call_operand.vmem [shape: f32[3,1,32], index: 6, kind: input, shape index: {}]   ;;  %s5861_s7 = inlined_call_operand.vmem [shape: f32[3,8,32], index: 7, kind: input, shape index: {}]   ;;  %s5862_s8 = inlined_call_operand.vmem [shape: f32[3,8,32], index: 8, kind: input, shape index: {}]   ;;  %s5863_s9 = inlined_call_operand.vmem [shape: f32[3,32,32], index: 9, kind: input, shape index: {}]   ;;  %s5864_s10 = inlined_call_operand.vmem [shape: f32[3,1,32], index: 10, kind: input, shape index: {}]   ;;  %s5865_s11 = inlined_call_operand.vmem [shape: f32[3,32,32], index: 11, kind: input, shape index: {}]   ;;  %s5866_s12 = inlined_call_operand.vmem [shape: f32[3,1,32], index: 12, kind: input, shape index: {}]   ;;  %s5867_s13 = inlined_call_operand.vmem [shape: f32[2,64,32], index: 13, kind: output, shape index: {}]  }
   0x1 LB: > { %s3505_s26 = sadd.s32 4294967295, %s4854_s25   ;;  %p3509_p0 = scmp.ge.s32.totalorder %s4854_s25, 1  ;;  %s4854_s25 = sphi %s4930_s25, %s23_s25  }
   0x2   : > { %p407_p1 = scmp.lt.s32.totalorder %s4854_s25, 3 }
   0x4   : > { %p408_p2 = pnand %p3509_p0, %p407_p1 }
   0x5   : > { %p4940_p3 = scmp.lt.s32.totalorder (!%p408_p2), %s3505_s26, 1  ;;  %vm489_vm0 = vcmask (!%p408_p2), 261120   ;;  %v637_v0 = vld [vmem:[%s5857_s3] sm:$0xff] (!%p408_p2)  ;;  %v638_v1 = vld [vmem:[%s5857_s3 + $0x8] sm:$0xff] (!%p408_p2)  ;;  %v4856_v2 = vmov (!%p408_p2), 0.0   ;;  %v639_v6 = vld [vmem:[%s5857_s3 + $0x10] sm:$0xff] (!%p408_p2) }
   0x6   : > { %411 = sbr.rel (%p408_p2) target bundleno = 1909 (0x775), region = 72  ;;  %491 = vst.msk [vmem:[#allocation2 + $0x8] sm:$0xff] (!%p408_p2), %vm489_vm0, %v4856_v2  ;;  %492 = vst.msk [vmem:[#allocation2 + $0x10] sm:$0xff] (!%p408_p2), %vm489_vm0, %v4856_v2  ;;  %v4400_v3 = vpack.c.bf16 (!%p408_p2), %v638_v1, %v637_v0  ;;  %v786_v4 = vld [vmem:[%s5858_s4] sm:$0xff] (!%p408_p2)  ;;  %v787_v5 = vld [vmem:[%s5858_s4 + $0x8] sm:$0xff] (!%p408_p2)  ;;  %s4857_s14 = smov (!%p408_p2), 64  }
   0x7   : > { %490 = vst.msk [vmem:[#allocation2] sm:$0xff] (!%p408_p2), %vm489_vm0, %v4856_v2  ;;  %493 = vst.msk [vmem:[#allocation2 + $0x18] sm:$0xff] (!%p408_p2), %vm489_vm0, %v4856_v2  ;;  %v4424_v7 = vpack.c.bf16 (!%p408_p2), %v787_v5, %v786_v4  ;;  %v640_v8 = vld [vmem:[%s5857_s3 + $0x18] sm:$0xff] (!%p408_p2)  ;;  %v788_v9 = vld [vmem:[%s5858_s4 + $0x10] sm:$0xff] (!%p408_p2)  ;;  %s4858_s27 = smov (!%p408_p2), 32   ;;  %vm628_vm1 = vcmask (!%p408_p2), 523264  }
   0x8   : > { %494 = vst.msk [vmem:[#allocation2 + $0x20] sm:$0xff] (!%p408_p2), %vm489_vm0, %v4856_v2  ;;  %495 = vst.msk [vmem:[#allocation2 + $0x28] sm:$0xff] (!%p408_p2), %vm489_vm0, %v4856_v2  ;;  %v789_v10 = vld [vmem:[%s5858_s4 + $0x18] sm:$0xff] (!%p408_p2)  ;;  %4401 = vmatprep.subr.bf16.mxu0 (!%p408_p2), %v4400_v3  ;;  %v4404_v11 = vpack.c.bf16 (!%p408_p2), %v640_v8, %v639_v6  ;;  %v641_v13 = vld [vmem:[%s5857_s3 + $0x20] sm:$0xff] (!%p408_p2)  ;;  %vm656_vm2 = vcmask (!%p408_p2), 785408   ;;  %vm911_vm3 = vcmask (!%p408_p2), 64512  }
   0x9   : > { %496 = vst.msk [vmem:[#allocation2 + $0x30] sm:$0xff] (!%p408_p2), %vm489_vm0, %v4856_v2  ;;  %497 = vst.msk [vmem:[#allocation2 + $0x38] sm:$0xff] (!%p408_p2), %vm489_vm0, %v4856_v2  ;;  %v4428_v12 = vpack.c.bf16 (!%p408_p2), %v789_v10, %v788_v9  ;;  %v642_v14 = vld [vmem:[%s5857_s3 + $0x28] sm:$0xff] (!%p408_p2)  ;;  %v790_v15 = vld [vmem:[%s5858_s4 + $0x20] sm:$0xff] (!%p408_p2)  ;;  %4425 = vmatprep.subr.bf16.mxu1 (!%p408_p2), %v4424_v7  ;;  %4403 = vmatpush3.bf16.msra.mxu0 (!%p408_p2), %v4400_v3 }
   0xa   : > { %498 = vst.msk [vmem:[#allocation2 + $0x40] sm:$0xff] (!%p408_p2), %vm489_vm0, %v4856_v2  ;;  %499 = vst.msk [vmem:[#allocation2 + $0x48] sm:$0xff] (!%p408_p2), %vm489_vm0, %v4856_v2  ;;  %v791_v16 = vld [vmem:[%s5858_s4 + $0x28] sm:$0xff] (!%p408_p2)  ;;  %v643_v17 = vld [vmem:[%s5857_s3 + $0x30] sm:$0xff] (!%p408_p2)  ;;  %4427 = vmatpush3.bf16.msra.mxu1 (!%p408_p2), %v4424_v7  ;;  %4405 = vmatprep.subr.bf16.mxu0 (!%p408_p2), %v4404_v11  ;;  %v4408_v18 = vpack.c.bf16 (!%p408_p2), %v642_v14, %v641_v13 }
   0xb   : > { %516 = vst.msk [vmem:[#allocation3] sm:$0xff] (!%p408_p2), %vm489_vm0, %v4856_v2  ;;  %517 = vst.msk [vmem:[#allocation3 + $0x8] sm:$0xff] (!%p408_p2), %vm489_vm0, %v4856_v2  ;;  %v644_v19 = vld [vmem:[%s5857_s3 + $0x38] sm:$0xff] (!%p408_p2)  ;;  %v792_v20 = vld [vmem:[%s5858_s4 + $0x30] sm:$0xff] (!%p408_p2)  ;;  %4429 = vmatprep.subr.bf16.mxu1 (!%p408_p2), %v4428_v12  ;;  %v4432_v25 = vpack.c.bf16 (!%p408_p2), %v791_v16, %v790_v15 }
   0xc   : > { %518 = vst.msk [vmem:[#allocation3 + $0x10] sm:$0xff] (!%p408_p2), %vm489_vm0, %v4856_v2  ;;  %519 = vst.msk [vmem:[#allocation3 + $0x18] sm:$0xff] (!%p408_p2), %vm489_vm0, %v4856_v2  ;;  %v793_v21 = vld [vmem:[%s5858_s4 + $0x38] sm:$0xff] (!%p408_p2)  ;;  %v4412_v31 = vpack.c.bf16 (!%p408_p2), %v644_v19, %v643_v17  ;;  %v645_v33 = vld [vmem:[%s5857_s3 + $0x40] sm:$0xff] (!%p408_p2) }
   0xd   : > { %520 = vst.msk [vmem:[#allocation3 + $0x20] sm:$0xff] %vm489_vm0, %v4856_v2  ;;  %521 = vst.msk [vmem:[#allocation3 + $0x28] sm:$0xff] %vm489_vm0, %v4856_v2  ;;  %s5870_s26 = smov (!%p4940_p3, %s3505_s26), 1  ;;  %4407 = vmatpush3.bf16.msra.mxu0 %v4404_v11  ;;  %v4436_v32 = vpack.c.bf16 %v793_v21, %v792_v20  ;;  %v646_v34 = vld [vmem:[%s5857_s3 + $0x48] sm:$0xff]  ;;  %v794_v35 = vld [vmem:[%s5858_s4 + $0x40] sm:$0xff] }
   0xe   : > { %522 = vst.msk [vmem:[#allocation3 + $0x30] sm:$0xff] %vm489_vm0, %v4856_v2  ;;  %523 = vst.msk [vmem:[#allocation3 + $0x38] sm:$0xff] %vm489_vm0, %v4856_v2  ;;  %s4999_s18 = sshll.u32 %s5870_s26, 6  ;;  %4431 = vmatpush3.bf16.msra.mxu1 %v4428_v12  ;;  %4409 = vmatprep.subr.bf16.mxu0 %v4408_v18  ;;  %v795_v36 = vld [vmem:[%s5858_s4 + $0x48] sm:$0xff]  ;;  %v4416_v37 = vpack.c.bf16 %v646_v34, %v645_v33  ;;  %v647_v38 = vld [vmem:[%s5857_s3 + $0x50] sm:$0xff] }
   0xf   : > { %s465_s28 = scalar_lea.vmem %s5854_s0, %s4999_s18  ;;  %4433 = vmatprep.subr.bf16.mxu1 %v4432_v25  ;;  %v4440_v41 = vpack.c.bf16 %v795_v36, %v794_v35  ;;  %v648_v42 = vld [vmem:[%s5857_s3 + $0x58] sm:$0xff]  ;;  %v796_v43 = vld [vmem:[%s5858_s4 + $0x50] sm:$0xff]  ;;  %v910_v51 = vld [vmem:[%s5861_s7] sm:$0xff]  ;;  %s5126_s26 = scalar_lea.vmem %s5856_s2, %s4999_s18 }
  0x10   : > { %v500_v22 = vld [vmem:[%s465_s28] sm:$0xff]  ;;  %v501_v23 = vld [vmem:[%s465_s28 + $0x8] sm:$0xff]  ;;  %v502_v24 = vld [vmem:[%s465_s28 + $0x10] sm:$0xff]  ;;  %v4420_v47 = vpack.c.bf16 %v648_v42, %v647_v38  ;;  %s470_s20 = scalar_lea.vmem %s5855_s1, %s4999_s18 }
  0x11   : > { %508 = vst.msk [vmem:[#allocation2 + $0x8] sm:$0xff] %vm489_vm0, %v500_v22  ;;  %509 = vst.msk [vmem:[#allocation2 + $0x10] sm:$0xff] %vm489_vm0, %v501_v23  ;;  %v503_v26 = vld [vmem:[%s465_s28 + $0x18] sm:$0xff]  ;;  %v504_v27 = vld [vmem:[%s465_s28 + $0x20] sm:$0xff]  ;;  %4411 = vmatpush3.bf16.msra.mxu0 %v4408_v18 }
  0x12   : > { %510 = vst.msk [vmem:[#allocation2 + $0x18] sm:$0xff] %vm489_vm0, %v502_v24  ;;  %v505_v28 = vld [vmem:[%s465_s28 + $0x28] sm:$0xff]  ;;  %511 = vst.msk [vmem:[#allocation2 + $0x20] sm:$0xff] %vm489_vm0, %v503_v26  ;;  %v506_v29 = vld [vmem:[%s465_s28 + $0x30] sm:$0xff]  ;;  %4435 = vmatpush3.bf16.msra.mxu1 %v4432_v25  ;;  %4413 = vmatprep.subr.bf16.mxu0 %v4412_v31 }
  0x13   : > { %512 = vst.msk [vmem:[#allocation2 + $0x28] sm:$0xff] %vm489_vm0, %v504_v27  ;;  %513 = vst.msk [vmem:[#allocation2 + $0x30] sm:$0xff] %vm489_vm0, %v505_v28  ;;  %v507_v30 = vld [vmem:[%s465_s28 + $0x38] sm:$0xff]  ;;  %4437 = vmatprep.subr.bf16.mxu1 %v4436_v32  ;;  %v1049_v8 = vld [vmem:[%s5862_s8] sm:$0xff] }
  0x14   : > { %514 = vst.msk [vmem:[#allocation2 + $0x38] sm:$0xff] %vm489_vm0, %v506_v29  ;;  %515 = vst.msk [vmem:[#allocation2 + $0x40] sm:$0xff] %vm489_vm0, %v507_v30  ;;  %v797_v44 = vld [vmem:[%s5858_s4 + $0x58] sm:$0xff]  ;;  %v5147_v42 = vld [vmem:[%s5126_s26 + $0x8] sm:$0xff] }
  0x15   : > { %4415 = vmatpush3.bf16.msra.mxu0 %v4412_v31  ;;  %v4444_v48 = vpack.c.bf16 %v797_v44, %v796_v43  ;;  %v5150_v43 = vld [vmem:[%s5126_s26 + $0x28] sm:$0xff]  ;;  %v5153_v44 = vld [vmem:[%s5126_s26 + $0x10] sm:$0xff] }
  0x16   : > { %4439 = vmatpush3.bf16.msra.mxu1 %v4436_v32  ;;  %4417 = vmatprep.subr.bf16.mxu0 %v4416_v37 }
  0x17   : > { %4441 = vmatprep.subr.bf16.mxu1 %v4440_v41 }
  0x18   : > { %v548_v39 = vld [vmem:[#allocation2 + $0x9] sm:$0xff] }
  0x19   : > { %v5043_v40 = vld [vmem:[#allocation2 + $0x8] sm:$0xff]  ;;  %596 = vrot.lane.b32.xlu1 %v548_v39, %s4857_s14  ;;  %v549_v45 = vld [vmem:[#allocation2 + $0x11] sm:$0xff]  ;;  %v5062_v49 = vld [vmem:[#allocation2 + $0x20] sm:$0xff]  ;;  %4419 = vmatpush3.bf16.msra.mxu0 %v4416_v37 }
  0x1a   : > { %564 = vrot.lane.b32.xlu0 %v5043_v40, %s4858_s27  ;;  %v5057_v46 = vld [vmem:[#allocation2 + $0x10] sm:$0xff]  ;;  %v5064_v50 = vld [vmem:[#allocation2 + $0x18] sm:$0xff]  ;;  %4443 = vmatpush3.bf16.msra.mxu1 %v4440_v41  ;;  %v551_v52 = vld [vmem:[#allocation2 + $0x21] sm:$0xff] }
  0x1b   : > { %4421 = vmatprep.subr.bf16.mxu0 %v4420_v47  ;;  %4445 = vmatprep.subr.bf16.mxu1 %v4444_v48  ;;  %v550_v53 = vld [vmem:[#allocation2 + $0x19] sm:$0xff]  ;;  %v5075_v54 = vld [vmem:[#allocation2 + $0x30] sm:$0xff]  ;;  %v5077_v55 = vld [vmem:[#allocation2 + $0x28] sm:$0xff] }
  0x1c   : > { %v553_v56 = vld [vmem:[#allocation2 + $0x31] sm:$0xff]  ;;  %v552_v57 = vld [vmem:[#allocation2 + $0x29] sm:$0xff]  ;;  %v5085_v58 = vld [vmem:[#allocation2 + $0x40] sm:$0xff] }
  0x1d   : > { %598 = vrot.lane.b32.xlu1 %v549_v45, %s4857_s14  ;;  %4423 = vmatpush3.bf16.msra.mxu0 %v4420_v47  ;;  %v5087_v59 = vld [vmem:[#allocation2 + $0x38] sm:$0xff]  ;;  %v555_v60 = vld [vmem:[#allocation2 + $0x41] sm:$0xff]  ;;  %v533_v3 = vld [vmem:[#allocation2 + $0xf] sm:$0xff] }
  0x1e   : > { %566 = vrot.lane.b32.xlu0 %v5057_v46, %s4858_s27  ;;  %4447 = vmatpush3.bf16.msra.mxu1 %v4444_v48  ;;  %v554_v61 = vld [vmem:[#allocation2 + $0x39] sm:$0xff]  ;;  %v532_v62 = vld [vmem:[#allocation2 + $0x7] sm:$0xff]  ;;  %v537_v21 = vld [vmem:[#allocation2 + $0x2f] sm:$0xff] }
  0x1f   : > { %4072 = vmatprep.subr.mxu0 %v910_v51  ;;  %4584 = vmatprep.subr.mxu1 %v910_v51  ;;  %v535_v11 = vld [vmem:[#allocation2 + $0x1f] sm:$0xff]  ;;  %v534_v12 = vld [vmem:[#allocation2 + $0x17] sm:$0xff]  ;;  %v536_v22 = vld [vmem:[#allocation2 + $0x27] sm:$0xff] }
  0x20   : > { %v539_v31 = vld [vmem:[#allocation2 + $0x3f] sm:$0xff]  ;;  %v538_v32 = vld [vmem:[#allocation2 + $0x37] sm:$0xff] }
  0x21   : > { %570 = vrot.lane.b32.xlu1 %v5062_v49, %s4858_s27  ;;  %v5133_v39 = vld [vmem:[%s5126_s26] sm:$0xff]  ;;  %v5156_v45 = vld [vmem:[%s5126_s26 + $0x30] sm:$0xff]  ;;  %v5165_v47 = vld [vmem:[%s5126_s26 + $0x18] sm:$0xff] }
  0x22   : > { %568 = vrot.lane.b32.xlu0 %v5064_v50, %s4858_s27  ;;  %v5136_v41 = vld [vmem:[%s5126_s26 + $0x20] sm:$0xff]  ;;  %v5168_v48 = vld [vmem:[%s5126_s26 + $0x38] sm:$0xff] }
  0x25   : > { %602 = vrot.lane.b32.xlu1 %v551_v52, %s4857_s14  ;;  %v1392_v52 = vld [vmem:[%s5863_s9 + $0x8] sm:$0xff] }
  0x26   : > { %600 = vrot.lane.b32.xlu0 %v550_v53, %s4857_s14  ;;  %v1227_v53 = vld [vmem:[%s5865_s11] sm:$0xff] }
  0x29   : > { %574 = vrot.lane.b32.xlu1 %v5075_v54, %s4858_s27 }
  0x2a   : > { %572 = vrot.lane.b32.xlu0 %v5077_v55, %s4858_s27 }
  0x2d   : > { %606 = vrot.lane.b32.xlu1 %v553_v56, %s4857_s14 }
  0x2e   : > { %604 = vrot.lane.b32.xlu0 %v552_v57, %s4857_s14  ;;  %v1228_v57 = vld [vmem:[%s5865_s11 + $0x8] sm:$0xff] }
  0x31   : > { %578 = vrot.lane.b32.xlu1 %v5085_v58, %s4858_s27 }
  0x32   : > { %576 = vrot.lane.b32.xlu0 %v5087_v59, %s4858_s27 }
  0x35   : > { %610 = vrot.lane.b32.xlu1 %v555_v60, %s4857_s14  ;;  %v4448_v60 = vpack.c.bf16 %v1228_v57, %v1227_v53 }
  0x36   : > { %608 = vrot.lane.b32.xlu0 %v554_v61, %s4857_s14  ;;  %v1393_v61 = vld [vmem:[%s5863_s9 + $0x10] sm:$0xff] }
  0x8b   : > { %v597_v63 = vpop.permute.xlu1 %596 }
  0x8c   : > { %v565_v0 = vpop.permute.xlu0 %564 }
  0x8d   : > { %v620_v1 = vsel %vm489_vm0, %v532_v62, %v565_v0  ;;  %v1394_v62 = vld [vmem:[%s5863_s9 + $0x18] sm:$0xff] }
  0x8e   : > { %v629_v2 = vsel %vm628_vm1, %v620_v1, %v597_v63  ;;  %v1229_v63 = vld [vmem:[%s5865_s11 + $0x10] sm:$0xff]  ;;  %v4460_v0 = vpack.c.bf16 %v1394_v62, %v1393_v61  ;;  %v1230_v1 = vld [vmem:[%s5865_s11 + $0x18] sm:$0xff] }
  0x8f   : > { %4024 = vmatprep.mubr.msk.f32.mxu0 %vm656_vm2, %v629_v2  ;;  %4060 = vmatprep.mubr.msk.f32.mxu1 %vm656_vm2, %v629_v2  ;;  %v599_v4 = vpop.permute.xlu1 %598  ;;  %v4452_v2 = vpack.c.bf16 %v1230_v1, %v1229_v63 }
  0x90   : > { %v567_v5 = vpop.permute.xlu0 %566 }
  0x91   : > { %v621_v6 = vsel %vm489_vm0, %v533_v3, %v567_v5  ;;  %v4859_v3 = vmov 0   ;;  %v482_v5 = vld [vmem:[%s470_s20 + $0x8] sm:$0xff] }
  0x92   : > { %v630_v7 = vsel %vm628_vm1, %v621_v6, %v599_v4  ;;  %4694 = vset.pattern.permute.xlu0 %v4859_v3  ;;  %4695 = vset.pattern.permute.xlu1 %v4859_v3  ;;  %v481_v4 = vld [vmem:[%s470_s20] sm:$0xff]  ;;  %v484_v6 = vld [vmem:[%s470_s20 + $0x18] sm:$0xff] }
  0x93   : > { %4025 = vmatmul.mubr.msk.f32.vlgmr.msra.gmra.mrb[0].mxu0 %vm656_vm2, %v630_v7  ;;  %4061 = vmatmul.mubr.msk.f32.vlgmr.msra.gmra.mrb[0].mxu1 %vm656_vm2, %v630_v7  ;;  %v571_v9 = vpop.permute.xlu1 %570  ;;  %v483_v7 = vld [vmem:[%s470_s20 + $0x10] sm:$0xff] }
  0x94   : > { %v569_v10 = vpop.permute.xlu0 %568  ;;  %4585 = vmatpush3.msra.mxu1 %v910_v51  ;;  %4073 = vmatpush3.msra.mxu0 %v910_v51  ;;  %v623_v13 = vsel %vm489_vm0, %v535_v11, %v571_v9  ;;  %v1391_v51 = vld [vmem:[%s5863_s9] sm:$0xff]  ;;  %v487_v11 = vld [vmem:[%s470_s20 + $0x30] sm:$0xff] }
  0x95   : > { %4086 = vmatprep.subr.mxu1 %v1049_v8  ;;  %v622_v14 = vsel %vm489_vm0, %v534_v12, %v569_v10  ;;  %v4456_v56 = vpack.c.bf16 %v1392_v52, %v1391_v51  ;;  %4449 = vmatprep.subr.bf16.mxu0 %v4448_v60  ;;  %v485_v9 = vld [vmem:[%s470_s20 + $0x20] sm:$0xff]  ;;  %v488_v10 = vld [vmem:[%s470_s20 + $0x38] sm:$0xff] }
  0x96   : > { %1525 = vperm.xlu0 %4694, %v481_v4   ;;  %1530 = vperm.xlu1 %4695, %v482_v5  }
  0x97   : > { %v603_v15 = vpop.permute.xlu1 %602 }
  0x98   : > { %v601_v16 = vpop.permute.xlu0 %600  ;;  %v632_v17 = vsel %vm628_vm1, %v623_v13, %v603_v15 }
  0x99   : > { %v631_v18 = vsel %vm628_vm1, %v622_v14, %v601_v16  ;;  %v3518_v14 = vld [vmem:[%s5859_s5] ss:$0 sm:$0xff] }
  0x9a   : > { %4027 = vmatprep.mubr.msk.f32.mxu0 %vm656_vm2, %v631_v18  ;;  %4063 = vmatprep.mubr.msk.f32.mxu1 %vm656_vm2, %v631_v18 }
  0x9b   : > { %4028 = vmatmul.mubr.msk.f32.gmra.mrb[2].mxu0 %vm656_vm2, %v632_v17  ;;  %4064 = vmatmul.mubr.msk.f32.gmra.mrb[2].mxu1 %vm656_vm2, %v632_v17  ;;  %v575_v19 = vpop.permute.xlu1 %574 }
  0x9c   : > { %v573_v20 = vpop.permute.xlu0 %572  ;;  %v625_v23 = vsel %vm489_vm0, %v537_v21, %v575_v19  ;;  %1540 = vperm.xlu0 %4694, %v484_v6   ;;  %1535 = vperm.xlu1 %4695, %v483_v7  }
  0x9d   : > { %v624_v24 = vsel %vm489_vm0, %v536_v22, %v573_v20 }
  0x9f   : > { %v607_v25 = vpop.permute.xlu1 %606 }
  0xa0   : > { %v605_v26 = vpop.permute.xlu0 %604  ;;  %v634_v27 = vsel %vm628_vm1, %v625_v23, %v607_v25  ;;  %1545 = vperm.xlu1 %4695, %v485_v9  }
  0xa1   : > { %v633_v28 = vsel %vm628_vm1, %v624_v24, %v605_v26 }
  0xa2   : > { %4030 = vmatprep.mubr.msk.f32.mxu0 %vm656_vm2, %v633_v28  ;;  %4066 = vmatprep.mubr.msk.f32.mxu1 %vm656_vm2, %v633_v28 }
  0xa3   : > { %4031 = vmatmul.mubr.msk.f32.gmra.mrb[4].mxu0 %vm656_vm2, %v634_v27  ;;  %4067 = vmatmul.mubr.msk.f32.gmra.mrb[4].mxu1 %vm656_vm2, %v634_v27  ;;  %v579_v29 = vpop.permute.xlu1 %578 }
  0xa4   : > { %v577_v30 = vpop.permute.xlu0 %576  ;;  %v627_v33 = vsel %vm489_vm0, %v539_v31, %v579_v29  ;;  %1555 = vperm.xlu1 %4695, %v487_v11  }
  0xa5   : > { %v626_v34 = vsel %vm489_vm0, %v538_v32, %v577_v30 }
  0xa7   : > { %v611_v35 = vpop.permute.xlu1 %610 }
  0xa8   : > { %v609_v36 = vpop.permute.xlu0 %608  ;;  %v636_v37 = vsel %vm628_vm1, %v627_v33, %v611_v35  ;;  %v3527_v33 = vld [vmem:[%s5860_s6] ss:$0 sm:$0xff] }
  0xa9   : > { %v635_v38 = vsel %vm628_vm1, %v626_v34, %v609_v36 }
  0xaa   : > { %4033 = vmatprep.mubr.msk.f32.mxu0 %vm656_vm2, %v635_v38  ;;  %4069 = vmatprep.mubr.msk.f32.mxu1 %vm656_vm2, %v635_v38 }
  0xab   : > { %4034 = vmatmul.mubr.msk.f32.gmra.mrb[6].mxu0 %vm656_vm2, %v636_v37  ;;  %4070 = vmatmul.mubr.msk.f32.gmra.mrb[6].mxu1 %vm656_vm2, %v636_v37 }
  0xac   : > { %4074 = vmatprep.mubr.msk.f32.mxu0 %vm911_vm3, %v5133_v39  ;;  %4080 = vmatprep.mubr.msk.f32.mxu1 %vm911_vm3, %v5136_v41 }
  0xaf   : > { %4075 = vmatmul.mubr.msk.f32.vlgmr.msra.gmra.mrb[0].mxu0 %vm911_vm3, %v5147_v42  ;;  %4081 = vmatmul.mubr.msk.f32.vlgmr.msra.gmra.mrb[8].mxu1 %vm911_vm3, %v5150_v43 }
  0xb0   : > { %4087 = vmatpush3.msra.mxu1 %v1049_v8  ;;  %4077 = vmatprep.mubr.msk.f32.mxu0 %vm911_vm3, %v5153_v44  ;;  %v486_v8 = vld [vmem:[%s470_s20 + $0x28] sm:$0xff] }
  0xb1   : > { %4083 = vmatprep.mubr.msk.f32.mxu1 %vm911_vm3, %v5156_v45  ;;  %4457 = vmatprep.subr.bf16.mxu1 %v4456_v56 }
  0xb2   : > { %4451 = vmatpush3.bf16.msra.mxu0 %v4448_v60  ;;  %1550 = vperm.xlu0 %4694, %v486_v8  }
  0xb3   : > { %4078 = vmatmul.mubr.msk.f32.gmra.mrb[2].mxu0 %vm911_vm3, %v5165_v47  ;;  %4084 = vmatmul.mubr.msk.f32.gmra.mrb[10].mxu1 %vm911_vm3, %v5168_v48 }
  0xb4   : > { %4088 = vmatprep.mubr.msk.f32.mxu1 %vm911_vm3, %v5133_v39  ;;  %4453 = vmatprep.subr.bf16.mxu0 %v4452_v2 }
  0xb6   : > { %4455 = vmatpush3.bf16.msra.mxu0 %v4452_v2  ;;  %1560 = vperm.xlu0 %4694, %v488_v10  }
  0xb7   : > { %4089 = vmatmul.mubr.msk.f32.vlgmr.msra.gmra.mrb[0].mxu1 %vm911_vm3, %v5147_v42 }
  0xb8   : > { %4091 = vmatprep.mubr.msk.f32.mxu1 %vm911_vm3, %v5153_v44  ;;  %4459 = vmatpush3.bf16.msra.mxu1 %v4456_v56 }
  0xb9   : > { %4461 = vmatprep.subr.bf16.mxu1 %v4460_v0 }
  0xbb   : > { %4092 = vmatmul.mubr.msk.f32.gmra.mrb[2].mxu1 %vm911_vm3, %v5165_v47 }
  0xbc   : > { %4094 = vmatprep.mubr.msk.f32.mxu1 %vm911_vm3, %v5136_v41  ;;  %4463 = vmatpush3.bf16.msra.mxu1 %v4460_v0 }
  0xbf   : > { %4095 = vmatmul.mubr.msk.f32.gmra.mrb[4].mxu1 %vm911_vm3, %v5150_v43 }
  0xc0   : > { %4097 = vmatprep.mubr.msk.f32.mxu1 %vm911_vm3, %v5156_v45 }
  0xc3   : > { %4098 = vmatmul.mubr.msk.f32.gmra.mrb[6].mxu1 %vm911_vm3, %v5168_v48 }
 0x176   : > { %v4032_v12 = vpop.f32.mrb[4].mxu0 }
 0x177   : > { %v767_v13 = vpop.f32.mrb[5].mxu0  ;;  %v773_v17 = vadd.f32 %v4032_v12, %v3518_v14 }
 0x178   : > { %v768_v18 = vadd.f32 %v3518_v14, %v767_v13 }
 0x17e   : > { %v4035_v15 = vpop.f32.mrb[6].mxu0 }
 0x17f   : > { %v777_v16 = vpop.f32.mrb[7].mxu0  ;;  %v783_v25 = vadd.f32 %v4035_v15, %v3518_v14 }
 0x180   : > { %v778_v26 = vadd.f32 %v3518_v14, %v777_v16 }
 0x182   : > { %v4076_v19 = vpop.f32.mrb[0].mxu0  ;;  %v4082_v20 = vpop.f32.mrb[8].mxu1 }
 0x183   : > { %v5223_v21 = vadd.f32 %v4082_v20, %v773_v17  ;;  %v1002_v22 = vpop.f32.mrb[1].mxu0  ;;  %v1022_v23 = vpop.f32.mrb[9].mxu1  ;;  %v4586_v61 = vadd.f32 %v4076_v19, %v3518_v14 }
 0x184   : > { %v5225_v24 = vadd.f32 %v1022_v23, %v768_v18  ;;  %v4587_v3 = vadd.f32 %v3518_v14, %v1002_v22 }
 0x186   : > { %v4079_v27 = vpop.f32.mrb[2].mxu0  ;;  %v4085_v28 = vpop.f32.mrb[10].mxu1 }
 0x187   : > { %v5227_v29 = vadd.f32 %v4085_v28, %v783_v25  ;;  %v1012_v30 = vpop.f32.mrb[3].mxu0  ;;  %v1032_v31 = vpop.f32.mrb[11].mxu1  ;;  %v4588_v5 = vadd.f32 %v4079_v27, %v3518_v14 }
 0x188   : > { %v5229_v32 = vadd.f32 %v1032_v31, %v778_v26  ;;  %v4589_v17 = vadd.f32 %v3518_v14, %v1012_v30 }
 0x18a   : > { %v4090_v34 = vpop.f32.mrb[0].mxu1 }
 0x18b   : > { %v4598_v35 = vadd.f32 %v4090_v34, %v3527_v33  ;;  %v1116_v36 = vpop.f32.mrb[1].mxu1 }
 0x18c   : > { %v4599_v37 = vadd.f32 %v3527_v33, %v1116_v36 }
 0x18d   : > { %v3553_v38 = vmul.f32 -1.442695, %v4598_v35 }
 0x18e   : > { %v3552_v51 = vmul.f32 -1.442695, %v4599_v37  ;;  %v4093_v52 = vpop.f32.mrb[2].mxu1 }
 0x18f   : > { %4696 = vpow2.f32 %v3553_v38  ;;  %v4600_v53 = vadd.f32 %v4093_v52, %v3527_v33  ;;  %v1126_v56 = vpop.f32.mrb[3].mxu1 }
 0x190   : > { %4698 = vpow2.f32 %v3552_v51  ;;  %v4601_v57 = vadd.f32 %v3527_v33, %v1126_v56 }
 0x191   : > { %v3555_v60 = vmul.f32 -1.442695, %v4600_v53 }
 0x192   : > { %v3554_v62 = vmul.f32 -1.442695, %v4601_v57  ;;  %v4096_v63 = vpop.f32.mrb[4].mxu1 }
 0x193   : > { %4700 = vpow2.f32 %v3555_v60  ;;  %v4602_v0 = vadd.f32 %v4096_v63, %v3527_v33  ;;  %v1136_v1 = vpop.f32.mrb[5].mxu1 }
 0x194   : > { %4702 = vpow2.f32 %v3554_v62  ;;  %v4603_v2 = vadd.f32 %v3527_v33, %v1136_v1 }
 0x195   : > { %v3557_v4 = vmul.f32 -1.442695, %v4602_v0  ;;  %4704 = vtanh.f32 %v4586_v61 }
 0x196   : > { %v3556_v6 = vmul.f32 -1.442695, %v4603_v2  ;;  %v4099_v7 = vpop.f32.mrb[6].mxu1 }
 0x197   : > { %4706 = vpow2.f32 %v3557_v4  ;;  %v4604_v8 = vadd.f32 %v4099_v7, %v3527_v33  ;;  %v1146_v9 = vpop.f32.mrb[7].mxu1  ;;  %v3579_v7 = vld [vmem:[%s5857_s3 + $0x68] sm:$0xff] }
 0x198   : > { %4708 = vpow2.f32 %v3556_v6  ;;  %v4605_v10 = vadd.f32 %v3527_v33, %v1146_v9  ;;  %v3578_v6 = vld [vmem:[%s5857_s3 + $0x60] sm:$0xff] }
 0x199   : > { %v4697_v11 = vpop.eup %4696  ;;  %4710 = vtanh.f32 %v4587_v3  ;;  %v3559_v12 = vmul.f32 -1.442695, %v4604_v8  ;;  %v3600_v8 = vld [vmem:[%s5858_s4 + $0x60] sm:$0xff]  ;;  %v4464_v9 = vpack.c.bf16 %v3579_v7, %v3578_v6  ;;  %v1370_v6 = vld [vmem:[#allocation3 + $0x18] sm:$0xff] }
 0x19a   : > { %v4699_v13 = vpop.eup %4698  ;;  %4712 = vtanh.f32 %v4588_v5  ;;  %v1196_v15 = vadd.f32 1.0, %v4697_v11  ;;  %v3558_v16 = vmul.f32 -1.442695, %v4605_v10  ;;  %v3601_v10 = vld [vmem:[%s5858_s4 + $0x68] sm:$0xff]  ;;  %v3580_v11 = vld [vmem:[%s5857_s3 + $0x70] sm:$0xff] }
 0x19b   : > { %v1195_v18 = vadd.f32 1.0, %v4699_v13  ;;  %4714 = vpow2.f32 %v3559_v12  ;;  %v3581_v12 = vld [vmem:[%s5857_s3 + $0x78] sm:$0xff]  ;;  %v4488_v13 = vpack.c.bf16 %v3601_v10, %v3600_v8  ;;  %4465 = vmatprep.subr.bf16.mxu0 %v4464_v9 }
 0x19c   : > { %4716 = vrcp.f32 %v1196_v15  ;;  %v4468_v15 = vpack.c.bf16 %v3581_v12, %v3580_v11  ;;  %v1369_v12 = vld [vmem:[#allocation3 + $0x10] sm:$0xff] }
 0x19d   : > { %v4701_v19 = vpop.eup %4700  ;;  %4718 = vrcp.f32 %v1195_v18  ;;  %v3582_v18 = vld [vmem:[%s5857_s3 + $0x80] sm:$0xff]  ;;  %4489 = vmatprep.subr.bf16.mxu1 %v4488_v13 }
 0x19e   : > { %v4703_v20 = vpop.eup %4702  ;;  %v1198_v22 = vadd.f32 1.0, %v4701_v19  ;;  %4720 = vpow2.f32 %v3558_v16  ;;  %v3602_v16 = vld [vmem:[%s5858_s4 + $0x70] sm:$0xff] }
 0x19f   : > { %4722 = vtanh.f32 %v4589_v17  ;;  %v1197_v23 = vadd.f32 1.0, %v4703_v20  ;;  %v4705_v25 = vpop.eup %4704  ;;  %v3603_v17 = vld [vmem:[%s5858_s4 + $0x78] sm:$0xff]  ;;  %v3583_v20 = vld [vmem:[%s5857_s3 + $0x88] sm:$0xff] }
 0x1a0   : > { %4724 = vrcp.f32 %v1198_v22  ;;  %v4492_v19 = vpack.c.bf16 %v3603_v17, %v3602_v16  ;;  %v3604_v22 = vld [vmem:[%s5858_s4 + $0x80] sm:$0xff] }
 0x1a1   : > { %v4707_v26 = vpop.eup %4706  ;;  %4726 = vrcp.f32 %v1197_v23  ;;  %v3605_v23 = vld [vmem:[%s5858_s4 + $0x88] sm:$0xff] }
 0x1a2   : > { %v4709_v27 = vpop.eup %4708  ;;  %4728 = vtanh.f32 %v5223_v21  ;;  %v1200_v28 = vadd.f32 1.0, %v4707_v26  ;;  %v4496_v26 = vpack.c.bf16 %v3605_v23, %v3604_v22 }
 0x1a3   : > { %v4711_v31 = vpop.eup %4710  ;;  %4730 = vtanh.f32 %v5225_v24  ;;  %v1199_v14 = vadd.f32 1.0, %v4709_v27  ;;  %v3584_v27 = vld [vmem:[%s5857_s3 + $0x90] sm:$0xff] }
 0x1a4   : > { %v4713_v30 = vpop.eup %4712  ;;  %4732 = vrcp.f32 %v1200_v28  ;;  %v3585_v28 = vld [vmem:[%s5857_s3 + $0x98] sm:$0xff] }
 0x1a5   : > { %v4715_v33 = vpop.eup %4714  ;;  %4734 = vrcp.f32 %v1199_v14  ;;  %v3607_v14 = vld [vmem:[%s5858_s4 + $0x98] sm:$0xff] }
 0x1a6   : > { %v4717_v34 = vpop.eup %4716  ;;  %v1202_v35 = vadd.f32 1.0, %v4715_v33  ;;  %4736 = vtanh.f32 %v5227_v29 }
 0x1a7   : > { %v4719_v36 = vpop.eup %4718  ;;  %v1220_v37 = vmul.f32 %v4717_v34, %v4705_v25  ;;  %v4472_v25 = vpack.c.bf16 %v3583_v20, %v3582_v18  ;;  %v5305_v34 = vld [vmem:[%s5866_s12] ss:$0 sm:$0xff]  ;;  %v3588_v18 = vld [vmem:[%s5857_s3 + $0xb0] sm:$0xff] }
 0x1a8   : > { %v4721_v38 = vpop.eup %4720  ;;  %4738 = vrcp.f32 %v1202_v35  ;;  %v1219_v51 = vmul.f32 %v4719_v36, %v4711_v31  ;;  %v3606_v31 = vld [vmem:[%s5858_s4 + $0x90] sm:$0xff]  ;;  %v5310_v35 = vld [vmem:[%s5864_s10] ss:$0 sm:$0xff]  ;;  %v5312_v36 = vpop.permute.xlu0 %1525 }
 0x1a9   : > { %v4723_v52 = vpop.eup %4722  ;;  %v1201_v21 = vadd.f32 1.0, %v4721_v38  ;;  %4740 = vtanh.f32 %v5229_v32  ;;  %v4500_v33 = vpack.c.bf16 %v3607_v14, %v3606_v31  ;;  %v3610_v20 = vld [vmem:[%s5858_s4 + $0xb0] sm:$0xff] }
 0x1aa   : > { %v4725_v53 = vpop.eup %4724  ;;  %4108 = vmatprep.mubr.msk.f32.mxu0 %vm489_vm0, %v1219_v51  ;;  %4128 = vmatprep.mubr.msk.f32.mxu1 %vm489_vm0, %v1219_v51  ;;  %v1368_v51 = vld [vmem:[#allocation3 + $0x8] sm:$0xff] }
 0x1ab   : > { %v4727_v24 = vpop.eup %4726  ;;  %4742 = vrcp.f32 %v1201_v21  ;;  %4109 = vmatmul.mubr.msk.f32.vlgmr.msra.gmra.mrb[8].mxu0 %vm489_vm0, %v1220_v37  ;;  %4129 = vmatmul.mubr.msk.f32.vlgmr.msra.gmra.mrb[12].mxu1 %vm489_vm0, %v1220_v37  ;;  %v1222_v29 = vmul.f32 %v4725_v53, %v4713_v30  ;;  %v4476_v30 = vpack.c.bf16 %v3585_v28, %v3584_v27  ;;  %v5314_v37 = vpop.permute.xlu1 %1530  ;;  %v3611_v27 = vld [vmem:[%s5858_s4 + $0xb8] sm:$0xff] }
 0x1ac   : > { %v4729_v56 = vpop.eup %4728  ;;  %v1221_v57 = vmul.f32 %v4727_v24, %v4723_v52  ;;  %4467 = vmatpush3.bf16.msra.mxu0 %v4464_v9  ;;  %4491 = vmatpush3.bf16.msra.mxu1 %v4488_v13 }
 0x1ad   : > { %v4731_v60 = vpop.eup %4730  ;;  %4469 = vmatprep.subr.bf16.mxu0 %v4468_v15  ;;  %4493 = vmatprep.subr.bf16.mxu1 %v4492_v19 }
 0x1ae   : > { %v4733_v61 = vpop.eup %4732  ;;  %4111 = vmatprep.mubr.msk.f32.mxu0 %vm489_vm0, %v1221_v57  ;;  %4131 = vmatprep.mubr.msk.f32.mxu1 %vm489_vm0, %v1221_v57 }
 0x1af   : > { %v4735_v32 = vpop.eup %4734  ;;  %4112 = vmatmul.mubr.msk.f32.gmra.mrb[10].mxu0 %vm489_vm0, %v1222_v29  ;;  %4132 = vmatmul.mubr.msk.f32.gmra.mrb[14].mxu1 %vm489_vm0, %v1222_v29  ;;  %v1224_v62 = vmul.f32 %v4733_v61, %v4729_v56  ;;  %v1367_v29 = vld [vmem:[#allocation3] sm:$0xff]  ;;  %v3586_v61 = vld [vmem:[%s5857_s3 + $0xa0] sm:$0xff]  ;;  %v5353_v22 = vpop.permute.xlu1 %1535 }
 0x1b0   : > { %v1223_v63 = vmul.f32 %v4735_v32, %v4731_v60  ;;  %v4737_v0 = vpop.eup %4736  ;;  %4471 = vmatpush3.bf16.msra.mxu0 %v4468_v15  ;;  %4495 = vmatpush3.bf16.msra.mxu1 %v4492_v19  ;;  %v3587_v32 = vld [vmem:[%s5857_s3 + $0xa8] sm:$0xff]  ;;  %v5338_v15 = vpop.permute.xlu0 %1540  ;;  %v3589_v19 = vld [vmem:[%s5857_s3 + $0xb8] sm:$0xff] }
 0x1b1   : > { %4473 = vmatprep.subr.bf16.mxu0 %v4472_v25  ;;  %4497 = vmatprep.subr.bf16.mxu1 %v4496_v26 }
 0x1b2   : > { %v4739_v1 = vpop.eup %4738  ;;  %4114 = vmatprep.mubr.msk.f32.mxu0 %vm489_vm0, %v1223_v63  ;;  %4134 = vmatprep.mubr.msk.f32.mxu1 %vm489_vm0, %v1223_v63 }
 0x1b3   : > { %4115 = vmatmul.mubr.msk.f32.gmra.mrb[12].mxu0 %vm489_vm0, %v1224_v62  ;;  %4135 = vmatmul.mubr.msk.f32.gmra.mrb[16].mxu1 %vm489_vm0, %v1224_v62  ;;  %v1226_v2 = vmul.f32 %v4739_v1, %v4737_v0  ;;  %v4741_v3 = vpop.eup %4740  ;;  %v3608_v62 = vld [vmem:[%s5858_s4 + $0xa0] sm:$0xff]  ;;  %v4480_v1 = vpack.c.bf16 %v3587_v32, %v3586_v61 }
 0x1b4   : > { %4475 = vmatpush3.bf16.msra.mxu0 %v4472_v25  ;;  %4499 = vmatpush3.bf16.msra.mxu1 %v4496_v26  ;;  %v4484_v26 = vpack.c.bf16 %v3589_v19, %v3588_v18  ;;  %v5372_v61 = vpop.permute.xlu0 %1550 }
 0x1b5   : > { %v4743_v4 = vpop.eup %4742  ;;  %4477 = vmatprep.subr.bf16.mxu0 %v4476_v30  ;;  %4501 = vmatprep.subr.bf16.mxu1 %v4500_v33 }
 0x1b6   : > { %v1225_v5 = vmul.f32 %v4743_v4, %v4741_v3 }
 0x1b8   : > { %4117 = vmatprep.mubr.msk.f32.mxu0 %vm489_vm0, %v1225_v5  ;;  %4137 = vmatprep.mubr.msk.f32.mxu1 %vm489_vm0, %v1225_v5 }
 0x1b9   : > { %4118 = vmatmul.mubr.msk.f32.gmra.mrb[14].mxu0 %vm489_vm0, %v1226_v2  ;;  %4138 = vmatmul.mubr.msk.f32.gmra.mrb[18].mxu1 %vm489_vm0, %v1226_v2  ;;  %v3609_v2 = vld [vmem:[%s5858_s4 + $0xa8] sm:$0xff] }
 0x1ba   : > { %4479 = vmatpush3.bf16.msra.mxu0 %v4476_v30  ;;  %4503 = vmatpush3.bf16.msra.mxu1 %v4500_v33  ;;  %v4504_v8 = vpack.c.bf16 %v3609_v2, %v3608_v62  ;;  %v1372_v30 = vld [vmem:[#allocation3 + $0x28] sm:$0xff] }
 0x1bb   : > { %4481 = vmatprep.subr.bf16.mxu0 %v4480_v1 }
 0x1bc   : > { %4505 = vmatprep.subr.bf16.mxu1 %v4504_v8 }
 0x1be   : > { %4483 = vmatpush3.bf16.msra.mxu0 %v4480_v1  ;;  %4507 = vmatpush3.bf16.msra.mxu1 %v4504_v8 }
 0x1bf   : > { %4485 = vmatprep.subr.bf16.mxu0 %v4484_v26 }
 0x1c2   : > { %4487 = vmatpush3.bf16.msra.mxu0 %v4484_v26 }
 0x27e   : > { %v4110_v38 = vpop.f32.mrb[8].mxu0  ;;  %v4130_v52 = vpop.f32.mrb[12].mxu1 }
 0x27f   : > { %v1334_v21 = vadd.f32 %v4110_v38, %v5305_v34  ;;  %v1474_v53 = vadd.f32 %v4130_v52, %v5310_v35  ;;  %v1328_v24 = vpop.f32.mrb[9].mxu0  ;;  %v1468_v56 = vpop.f32.mrb[13].mxu1  ;;  %v4508_v38 = vpack.c.bf16 %v3611_v27, %v3610_v20 }
 0x280   : > { %v1329_v57 = vadd.f32 %v5305_v34, %v1328_v24  ;;  %v1469_v60 = vadd.f32 %v5310_v35, %v1468_v56 }
 0x281   : > { %v1376_v63 = vadd.f32 %v1368_v51, %v1334_v21  ;;  %v1516_v0 = vadd.f32 %v1474_v53, %v5057_v46  ;;  %v1371_v53 = vld [vmem:[#allocation3 + $0x20] sm:$0xff]  ;;  %4509 = vmatprep.subr.bf16.mxu1 %v4508_v38 }
 0x282   : > { %v1375_v3 = vadd.f32 %v1367_v29, %v1329_v57  ;;  %v1515_v4 = vadd.f32 %v1469_v60, %v5043_v40  ;;  %v4113_v5 = vpop.f32.mrb[10].mxu0  ;;  %v4133_v7 = vpop.f32.mrb[14].mxu1  ;;  %4511 = vmatpush3.bf16.msra.mxu1 %v4508_v38 }
 0x283   : > { %1384 = vst.msk [vmem:[#allocation3 + $0x8] sm:$0xff] %vm489_vm0, %v1376_v63  ;;  %v1564_v9 = vmul.f32 %v5314_v37, %v1516_v0  ;;  %v1344_v10 = vadd.f32 %v4113_v5, %v5305_v34  ;;  %v1484_v46 = vadd.f32 %v4133_v7, %v5310_v35  ;;  %v1338_v11 = vpop.f32.mrb[11].mxu0  ;;  %v1478_v13 = vpop.f32.mrb[15].mxu1  ;;  %v1373_v7 = vld [vmem:[#allocation3 + $0x30] sm:$0xff] }
 0x284   : > { %1383 = vst.msk [vmem:[#allocation3] sm:$0xff] %vm489_vm0, %v1375_v3  ;;  %v1563_v40 = vmul.f32 %v5312_v36, %v1515_v4  ;;  %v1339_v16 = vadd.f32 %v5305_v34, %v1338_v11  ;;  %v1479_v17 = vadd.f32 %v5310_v35, %v1478_v13  ;;  %v5376_v63 = vpop.permute.xlu1 %1545  ;;  %v5397_v13 = vpop.permute.xlu0 %1560 }
 0x285   : > { %1572 = vst.msk [vmem:[#allocation2 + $0x10] sm:$0xff] %vm489_vm0, %v1564_v9  ;;  %v1378_v23 = vadd.f32 %v1370_v6, %v1344_v10  ;;  %v1518_v25 = vadd.f32 %v1484_v46, %v5062_v49 }
 0x286   : > { %1571 = vst.msk [vmem:[#allocation2 + $0x8] sm:$0xff] %vm489_vm0, %v1563_v40  ;;  %v1377_v28 = vadd.f32 %v1369_v12, %v1339_v16  ;;  %v1517_v31 = vadd.f32 %v1479_v17, %v5064_v50  ;;  %v4116_v14 = vpop.f32.mrb[12].mxu0  ;;  %v4136_v33 = vpop.f32.mrb[16].mxu1 }
 0x287   : > { %1386 = vst.msk [vmem:[#allocation3 + $0x18] sm:$0xff] %vm489_vm0, %v1378_v23  ;;  %v1566_v51 = vmul.f32 %v5338_v15, %v1518_v25  ;;  %v1354_v49 = vadd.f32 %v4116_v14, %v5305_v34  ;;  %v1494_v52 = vadd.f32 %v4136_v33, %v5310_v35  ;;  %v1348_v21 = vpop.f32.mrb[13].mxu0  ;;  %v1488_v24 = vpop.f32.mrb[17].mxu1 }
 0x288   : > { %1385 = vst.msk [vmem:[#allocation3 + $0x10] sm:$0xff] %vm489_vm0, %v1377_v28  ;;  %v1565_v50 = vmul.f32 %v5353_v22, %v1517_v31  ;;  %v1349_v29 = vadd.f32 %v5305_v34, %v1348_v21  ;;  %v1489_v56 = vadd.f32 %v5310_v35, %v1488_v24  ;;  %v5402_v18 = vpop.permute.xlu1 %1555  ;;  %v3622_v28 = vld [vmem:[%s5861_s7 + $0x8] sm:$0xff] }
 0x289   : > { %1574 = vst.msk [vmem:[#allocation2 + $0x20] sm:$0xff] %vm489_vm0, %v1566_v51  ;;  %v1380_v57 = vadd.f32 %v1372_v30, %v1354_v49  ;;  %v1520_v60 = vadd.f32 %v1494_v52, %v5075_v54  ;;  %v1374_v54 = vld [vmem:[#allocation3 + $0x38] sm:$0xff]  ;;  %4212 = vmatprep.subr.mxu0 %v3622_v28 }
 0x28a   : > { %1573 = vst.msk [vmem:[#allocation2 + $0x18] sm:$0xff] %vm489_vm0, %v1565_v50  ;;  %v1379_v32 = vadd.f32 %v1371_v53, %v1349_v29  ;;  %v1519_v62 = vadd.f32 %v1489_v56, %v5077_v55 }
 0x28b   : > { %1388 = vst.msk [vmem:[#allocation3 + $0x28] sm:$0xff] %vm489_vm0, %v1380_v57  ;;  %v1568_v0 = vmul.f32 %v5372_v61, %v1520_v60 }
 0x28c   : > { %1387 = vst.msk [vmem:[#allocation3 + $0x20] sm:$0xff] %vm489_vm0, %v1379_v32  ;;  %v1567_v1 = vmul.f32 %v5376_v63, %v1519_v62  ;;  %v4119_v2 = vpop.f32.mrb[14].mxu0  ;;  %v4139_v3 = vpop.f32.mrb[18].mxu1  ;;  %v5382_v4 = vld [vmem:[#allocation2 + $0x10] sm:$0xff] }
 0x28d   : > { %1576 = vst.msk [vmem:[#allocation2 + $0x30] sm:$0xff] %vm489_vm0, %v1568_v0  ;;  %v1364_v5 = vadd.f32 %v4119_v2, %v5305_v34  ;;  %v1504_v55 = vadd.f32 %v4139_v3, %v5310_v35  ;;  %v1358_v6 = vpop.f32.mrb[15].mxu0  ;;  %v1498_v8 = vpop.f32.mrb[19].mxu1  ;;  %1613 = vrot.lane.b32.xlu0 %v5382_v4, %s4858_s27  ;;  %v5389_v9 = vld [vmem:[#allocation2 + $0x8] sm:$0xff] }
 0x28e   : > { %1575 = vst.msk [vmem:[#allocation2 + $0x28] sm:$0xff] %vm489_vm0, %v1567_v1  ;;  %v1359_v10 = vadd.f32 %v5305_v34, %v1358_v6  ;;  %v1499_v46 = vadd.f32 %v5310_v35, %v1498_v8  ;;  %1611 = vrot.lane.b32.xlu1 %v5389_v9, %s4858_s27  ;;  %v1595_v35 = vld [vmem:[#allocation2 + $0xa] sm:$0xff] }
 0x28f   : > { %v1382_v11 = vadd.f32 %v1374_v54, %v1364_v5  ;;  %v1522_v12 = vadd.f32 %v1504_v55, %v5085_v58  ;;  %v1579_v21 = vld [vmem:[#allocation2 + $0x6] sm:$0xff]  ;;  %v1580_v56 = vld [vmem:[#allocation2 + $0xe] sm:$0xff] }
 0x290   : > { %v1381_v40 = vadd.f32 %v1373_v7, %v1359_v10  ;;  %v1521_v16 = vadd.f32 %v1499_v46, %v5087_v59  ;;  %v5400_v17 = vld [vmem:[#allocation2 + $0x20] sm:$0xff]  ;;  %v3631_v59 = vld [vmem:[%s5862_s8 + $0x8] sm:$0xff] }
 0x291   : > { %1390 = vst.msk [vmem:[#allocation3 + $0x38] sm:$0xff] %vm489_vm0, %v1382_v11  ;;  %v1570_v34 = vmul.f32 %v5397_v13, %v1522_v12  ;;  %1617 = vrot.lane.b32.xlu0 %v5400_v17, %s4858_s27  ;;  %4226 = vmatprep.subr.mxu1 %v3631_v59  ;;  %v1596_v19 = vld [vmem:[#allocation2 + $0x12] sm:$0xff]  ;;  %v1597_v25 = vld [vmem:[#allocation2 + $0x1a] sm:$0xff] }
 0x292   : > { %1389 = vst.msk [vmem:[#allocation3 + $0x30] sm:$0xff] %vm489_vm0, %v1381_v40  ;;  %v1569_v58 = vmul.f32 %v5402_v18, %v1521_v16  ;;  %1643 = vrot.lane.b32.xlu1 %v1595_v35, %s4857_s14  ;;  %v5417_v20 = vld [vmem:[#allocation2 + $0x18] sm:$0xff] }
 0x293   : > { %1578 = vst.msk [vmem:[#allocation2 + $0x40] sm:$0xff] %vm489_vm0, %v1570_v34  ;;  %v1581_v0 = vld [vmem:[#allocation2 + $0x16] sm:$0xff]  ;;  %v1582_v5 = vld [vmem:[#allocation2 + $0x1e] sm:$0xff] }
 0x294   : > { %1577 = vst.msk [vmem:[#allocation2 + $0x38] sm:$0xff] %vm489_vm0, %v1569_v58  ;;  %v5421_v23 = vld [vmem:[#allocation2 + $0x30] sm:$0xff] }
 0x295   : > { %1645 = vrot.lane.b32.xlu0 %v1596_v19, %s4857_s14  ;;  %v1598_v26 = vld [vmem:[#allocation2 + $0x22] sm:$0xff]  ;;  %v1599_v14 = vld [vmem:[#allocation2 + $0x2a] sm:$0xff] }
 0x296   : > { %1615 = vrot.lane.b32.xlu1 %v5417_v20, %s4858_s27  ;;  %v5427_v27 = vld [vmem:[#allocation2 + $0x28] sm:$0xff] }
 0x297   : > { %v1583_v10 = vld [vmem:[#allocation2 + $0x26] sm:$0xff]  ;;  %v1584_v16 = vld [vmem:[#allocation2 + $0x2e] sm:$0xff] }
 0x299   : > { %1621 = vrot.lane.b32.xlu0 %v5421_v23, %s4858_s27 }
 0x29a   : > { %1647 = vrot.lane.b32.xlu1 %v1597_v25, %s4857_s14  ;;  %v5434_v31 = vld [vmem:[#allocation2 + $0x40] sm:$0xff] }
 0x29b   : > { %v1600_v30 = vld [vmem:[#allocation2 + $0x32] sm:$0xff]  ;;  %v1602_v38 = vld [vmem:[#allocation2 + $0x42] sm:$0xff]  ;;  %v1601_v51 = vld [vmem:[#allocation2 + $0x3a] sm:$0xff] }
 0x29c   : > { %v5440_v33 = vld [vmem:[#allocation2 + $0x38] sm:$0xff] }
 0x29d   : > { %1649 = vrot.lane.b32.xlu0 %v1598_v26, %s4857_s14  ;;  %v1585_v19 = vld [vmem:[#allocation2 + $0x36] sm:$0xff]  ;;  %v1586_v26 = vld [vmem:[#allocation2 + $0x3e] sm:$0xff] }
 0x29e   : > { %1619 = vrot.lane.b32.xlu1 %v5427_v27, %s4858_s27 }
 0x2a1   : > { %1625 = vrot.lane.b32.xlu0 %v5434_v31, %s4858_s27 }
 0x2a2   : > { %1651 = vrot.lane.b32.xlu1 %v1599_v14, %s4857_s14 }
 0x2a5   : > { %1653 = vrot.lane.b32.xlu0 %v1600_v30, %s4857_s14 }
 0x2a6   : > { %1623 = vrot.lane.b32.xlu1 %v5440_v33, %s4858_s27 }
 0x2a9   : > { %1657 = vrot.lane.b32.xlu0 %v1602_v38, %s4857_s14 }
 0x2aa   : > { %1655 = vrot.lane.b32.xlu1 %v1601_v51, %s4857_s14 }
 0x2ff   : > { %v1614_v49 = vpop.permute.xlu0 %1613 }
 0x300   : > { %v1612_v52 = vpop.permute.xlu1 %1611  ;;  %v1668_v57 = vsel %vm489_vm0, %v1580_v56, %v1614_v49  ;;  %v3650_v49 = vld [vmem:[%s5865_s11 + $0x30] sm:$0xff] }
 0x301   : > { %v1667_v24 = vsel %vm489_vm0, %v1579_v21, %v1612_v52  ;;  %v3651_v21 = vld [vmem:[%s5865_s11 + $0x38] sm:$0xff] }
 0x303   : > { %v1618_v53 = vpop.permute.xlu0 %1617 }
 0x304   : > { %v1644_v50 = vpop.permute.xlu1 %1643  ;;  %v1670_v55 = vsel %vm489_vm0, %v1582_v5, %v1618_v53  ;;  %v4516_v53 = vpack.c.bf16 %v3651_v21, %v3650_v49 }
 0x305   : > { %v1675_v29 = vsel %vm628_vm1, %v1667_v24, %v1644_v50  ;;  %v3613_v24 = vld [vmem:[%s5860_s6 + $0x1] ss:$0 sm:$0xff] }
 0x306   : > { %4164 = vmatprep.mubr.msk.f32.mxu0 %vm656_vm2, %v1675_v29  ;;  %4200 = vmatprep.mubr.msk.f32.mxu1 %vm656_vm2, %v1675_v29 }
 0x307   : > { %v1646_v60 = vpop.permute.xlu0 %1645 }
 0x308   : > { %v1676_v32 = vsel %vm628_vm1, %v1668_v57, %v1646_v60  ;;  %v1616_v62 = vpop.permute.xlu1 %1615 }
 0x309   : > { %4165 = vmatmul.mubr.msk.f32.vlgmr.msra.gmra.mrb[16].mxu0 %vm656_vm2, %v1676_v32  ;;  %4201 = vmatmul.mubr.msk.f32.vlgmr.msra.gmra.mrb[20].mxu1 %vm656_vm2, %v1676_v32  ;;  %v1669_v2 = vsel %vm489_vm0, %v1581_v0, %v1616_v62 }
 0x30a   : > { %4227 = vmatpush3.msra.mxu1 %v3631_v59  ;;  %4213 = vmatpush3.msra.mxu0 %v3622_v28 }
 0x30b   : > { %v1622_v1 = vpop.permute.xlu0 %1621 }
 0x30c   : > { %v1648_v54 = vpop.permute.xlu1 %1647  ;;  %v1672_v34 = vsel %vm489_vm0, %v1584_v16, %v1622_v1 }
 0x30d   : > { %v1677_v3 = vsel %vm628_vm1, %v1669_v2, %v1648_v54  ;;  %v5540_v54 = vld [vmem:[%s5859_s5 + $0x1] ss:$0 sm:$0xff] }
 0x30e   : > { %4167 = vmatprep.mubr.msk.f32.mxu0 %vm656_vm2, %v1677_v3  ;;  %4203 = vmatprep.mubr.msk.f32.mxu1 %vm656_vm2, %v1677_v3 }
 0x30f   : > { %v1650_v6 = vpop.permute.xlu0 %1649 }
 0x310   : > { %v1678_v7 = vsel %vm628_vm1, %v1670_v55, %v1650_v6  ;;  %v1620_v8 = vpop.permute.xlu1 %1619 }
 0x311   : > { %4168 = vmatmul.mubr.msk.f32.gmra.mrb[18].mxu0 %vm656_vm2, %v1678_v7  ;;  %4204 = vmatmul.mubr.msk.f32.gmra.mrb[22].mxu1 %vm656_vm2, %v1678_v7  ;;  %v1671_v11 = vsel %vm489_vm0, %v1583_v10, %v1620_v8 }
 0x313   : > { %v1626_v46 = vpop.permute.xlu0 %1625 }
 0x314   : > { %v1652_v12 = vpop.permute.xlu1 %1651  ;;  %v1674_v30 = vsel %vm489_vm0, %v1586_v26, %v1626_v46 }
 0x315   : > { %v1679_v40 = vsel %vm628_vm1, %v1671_v11, %v1652_v12 }
 0x316   : > { %4170 = vmatprep.mubr.msk.f32.mxu0 %vm656_vm2, %v1679_v40  ;;  %4206 = vmatprep.mubr.msk.f32.mxu1 %vm656_vm2, %v1679_v40 }
 0x317   : > { %v1654_v35 = vpop.permute.xlu0 %1653 }
 0x318   : > { %v1680_v58 = vsel %vm628_vm1, %v1672_v34, %v1654_v35  ;;  %v1624_v59 = vpop.permute.xlu1 %1623 }
 0x319   : > { %4171 = vmatmul.mubr.msk.f32.gmra.mrb[20].mxu0 %vm656_vm2, %v1680_v58  ;;  %4207 = vmatmul.mubr.msk.f32.gmra.mrb[24].mxu1 %vm656_vm2, %v1680_v58  ;;  %v1673_v28 = vsel %vm489_vm0, %v1585_v19, %v1624_v59 }
 0x31b   : > { %v1658_v25 = vpop.permute.xlu0 %1657 }
 0x31c   : > { %v1656_v14 = vpop.permute.xlu1 %1655  ;;  %v1682_v51 = vsel %vm628_vm1, %v1674_v30, %v1658_v25 }
 0x31d   : > { %v1681_v38 = vsel %vm628_vm1, %v1673_v28, %v1656_v14 }
 0x31e   : > { %4173 = vmatprep.mubr.msk.f32.mxu0 %vm656_vm2, %v1681_v38  ;;  %4209 = vmatprep.mubr.msk.f32.mxu1 %vm656_vm2, %v1681_v38 }
 0x31f   : > { %4174 = vmatmul.mubr.msk.f32.gmra.mrb[22].mxu0 %vm656_vm2, %v1682_v51  ;;  %4210 = vmatmul.mubr.msk.f32.gmra.mrb[26].mxu1 %vm656_vm2, %v1682_v51 }
 0x320   : > { %4214 = vmatprep.mubr.msk.f32.mxu0 %vm911_vm3, %v5133_v39  ;;  %4228 = vmatprep.mubr.msk.f32.mxu1 %vm911_vm3, %v5133_v39  ;;  %v3662_v39 = vld [vmem:[%s5863_s9 + $0x20] sm:$0xff] }
 0x323   : > { %4215 = vmatmul.mubr.msk.f32.vlgmr.msra.gmra.mrb[16].mxu0 %vm911_vm3, %v5147_v42  ;;  %4229 = vmatmul.mubr.msk.f32.vlgmr.msra.gmra.mrb[20].mxu1 %vm911_vm3, %v5147_v42  ;;  %v3648_v42 = vld [vmem:[%s5865_s11 + $0x20] sm:$0xff] }
 0x324   : > { %4217 = vmatprep.mubr.msk.f32.mxu0 %vm911_vm3, %v5153_v44  ;;  %4231 = vmatprep.mubr.msk.f32.mxu1 %vm911_vm3, %v5153_v44  ;;  %v3649_v44 = vld [vmem:[%s5865_s11 + $0x28] sm:$0xff] }
 0x327   : > { %4218 = vmatmul.mubr.msk.f32.gmra.mrb[18].mxu0 %vm911_vm3, %v5165_v47  ;;  %4232 = vmatmul.mubr.msk.f32.gmra.mrb[22].mxu1 %vm911_vm3, %v5165_v47  ;;  %v3664_v47 = vld [vmem:[%s5863_s9 + $0x30] sm:$0xff] }
 0x328   : > { %4220 = vmatprep.mubr.msk.f32.mxu0 %vm911_vm3, %v5136_v41  ;;  %4234 = vmatprep.mubr.msk.f32.mxu1 %vm911_vm3, %v5136_v41  ;;  %v3663_v41 = vld [vmem:[%s5863_s9 + $0x28] sm:$0xff] }
 0x32b   : > { %4221 = vmatmul.mubr.msk.f32.gmra.mrb[20].mxu0 %vm911_vm3, %v5150_v43  ;;  %4235 = vmatmul.mubr.msk.f32.gmra.mrb[24].mxu1 %vm911_vm3, %v5150_v43  ;;  %v4520_v43 = vpack.c.bf16 %v3663_v41, %v3662_v39 }
 0x32c   : > { %4223 = vmatprep.mubr.msk.f32.mxu0 %vm911_vm3, %v5156_v45  ;;  %4237 = vmatprep.mubr.msk.f32.mxu1 %vm911_vm3, %v5156_v45  ;;  %v4512_v45 = vpack.c.bf16 %v3649_v44, %v3648_v42 }
 0x32d   : > { %4521 = vmatprep.subr.bf16.mxu1 %v4520_v43 }
 0x32e   : > { %4523 = vmatpush3.bf16.msra.mxu1 %v4520_v43  ;;  %4513 = vmatprep.subr.bf16.mxu0 %v4512_v45 }
 0x32f   : > { %4224 = vmatmul.mubr.msk.f32.gmra.mrb[22].mxu0 %vm911_vm3, %v5168_v48  ;;  %4238 = vmatmul.mubr.msk.f32.gmra.mrb[26].mxu1 %vm911_vm3, %v5168_v48  ;;  %v3665_v48 = vld [vmem:[%s5863_s9 + $0x38] sm:$0xff] }
 0x330   : > { %v4524_v52 = vpack.c.bf16 %v3665_v48, %v3664_v47  ;;  %4515 = vmatpush3.bf16.msra.mxu0 %v4512_v45 }
 0x331   : > { %4517 = vmatprep.subr.bf16.mxu0 %v4516_v53 }
 0x332   : > { %4525 = vmatprep.subr.bf16.mxu1 %v4524_v52 }
 0x333   : > { %4527 = vmatpush3.bf16.msra.mxu1 %v4524_v52 }
 0x334   : > { %4519 = vmatpush3.bf16.msra.mxu0 %v4516_v53 }
 0x3f6   : > { %v4216_v50 = vpop.f32.mrb[16].mxu0  ;;  %v4230_v29 = vpop.f32.mrb[20].mxu1 }
 0x3f7   : > { %v4614_v56 = vadd.f32 %v4230_v29, %v3613_v24  ;;  %v2027_v57 = vpop.f32.mrb[17].mxu0  ;;  %v2142_v60 = vpop.f32.mrb[21].mxu1  ;;  %v4606_v8 = vadd.f32 %v4216_v50, %v5540_v54 }
 0x3f8   : > { %v4615_v32 = vadd.f32 %v3613_v24, %v2142_v60  ;;  %v4607_v35 = vadd.f32 %v5540_v54, %v2027_v57 }
 0x3f9   : > { %v3641_v62 = vmul.f32 -1.442695, %v4614_v56 }
 0x3fa   : > { %v3640_v0 = vmul.f32 -1.442695, %v4615_v32  ;;  %v4219_v1 = vpop.f32.mrb[18].mxu0  ;;  %v4233_v2 = vpop.f32.mrb[22].mxu1 }
 0x3fb   : > { %4744 = vpow2.f32 %v3641_v62  ;;  %v4616_v3 = vadd.f32 %v4233_v2, %v3613_v24  ;;  %v2037_v5 = vpop.f32.mrb[19].mxu0  ;;  %v2152_v55 = vpop.f32.mrb[23].mxu1  ;;  %v4608_v59 = vadd.f32 %v4219_v1, %v5540_v54 }
 0x3fc   : > { %4746 = vpow2.f32 %v3640_v0  ;;  %v4617_v6 = vadd.f32 %v3613_v24, %v2152_v55  ;;  %v4609_v45 = vadd.f32 %v5540_v54, %v2037_v5 }
 0x3fd   : > { %v3643_v7 = vmul.f32 -1.442695, %v4616_v3 }
 0x3fe   : > { %v3642_v10 = vmul.f32 -1.442695, %v4617_v6  ;;  %v4222_v46 = vpop.f32.mrb[20].mxu0  ;;  %v4236_v11 = vpop.f32.mrb[24].mxu1 }
 0x3ff   : > { %4748 = vpow2.f32 %v3643_v7  ;;  %v4618_v12 = vadd.f32 %v4236_v11, %v3613_v24  ;;  %v2047_v40 = vpop.f32.mrb[21].mxu0  ;;  %v2162_v16 = vpop.f32.mrb[25].mxu1  ;;  %v4610_v52 = vadd.f32 %v4222_v46, %v5540_v54 }
 0x400   : > { %4750 = vpow2.f32 %v3642_v10  ;;  %v4619_v34 = vadd.f32 %v3613_v24, %v2162_v16  ;;  %v4611_v53 = vadd.f32 %v5540_v54, %v2047_v40 }
 0x401   : > { %v3645_v58 = vmul.f32 -1.442695, %v4618_v12  ;;  %4752 = vtanh.f32 %v4606_v8 }
 0x402   : > { %v3644_v19 = vmul.f32 -1.442695, %v4619_v34  ;;  %v4225_v25 = vpop.f32.mrb[22].mxu0  ;;  %v4239_v26 = vpop.f32.mrb[26].mxu1 }
 0x403   : > { %4754 = vpow2.f32 %v3645_v58  ;;  %v4620_v28 = vadd.f32 %v4239_v26, %v3613_v24  ;;  %v2057_v14 = vpop.f32.mrb[23].mxu0  ;;  %v2172_v30 = vpop.f32.mrb[27].mxu1  ;;  %v4612_v32 = vadd.f32 %v4225_v25, %v5540_v54 }
 0x404   : > { %4756 = vpow2.f32 %v3644_v19  ;;  %v4621_v38 = vadd.f32 %v3613_v24, %v2172_v30  ;;  %v4613_v3 = vadd.f32 %v5540_v54, %v2057_v14 }
 0x405   : > { %v4745_v51 = vpop.eup %4744  ;;  %4758 = vtanh.f32 %v4607_v35  ;;  %v3647_v39 = vmul.f32 -1.442695, %v4620_v28 }
 0x406   : > { %v4747_v41 = vpop.eup %4746  ;;  %v2222_v42 = vadd.f32 1.0, %v4745_v51  ;;  %4760 = vtanh.f32 %v4608_v59  ;;  %v3646_v43 = vmul.f32 -1.442695, %v4621_v38  ;;  %v3676_v38 = vld [vmem:[%s5857_s3 + $0xc0] sm:$0xff]  ;;  %v3677_v51 = vld [vmem:[%s5857_s3 + $0xc8] sm:$0xff] }
 0x407   : > { %v2221_v44 = vadd.f32 1.0, %v4747_v41  ;;  %4762 = vpow2.f32 %v3647_v39  ;;  %v3698_v39 = vld [vmem:[%s5858_s4 + $0xc0] sm:$0xff]  ;;  %v4528_v41 = vpack.c.bf16 %v3677_v51, %v3676_v38 }
 0x408   : > { %4764 = vrcp.f32 %v2222_v42  ;;  %v3699_v42 = vld [vmem:[%s5858_s4 + $0xc8] sm:$0xff] }
 0x409   : > { %v4749_v47 = vpop.eup %4748  ;;  %4766 = vrcp.f32 %v2221_v44  ;;  %v3679_v44 = vld [vmem:[%s5857_s3 + $0xd8] sm:$0xff]  ;;  %4529 = vmatprep.subr.bf16.mxu0 %v4528_v41 }
 0x40a   : > { %v4751_v48 = vpop.eup %4750  ;;  %v2224_v49 = vadd.f32 1.0, %v4749_v47  ;;  %4768 = vpow2.f32 %v3646_v43  ;;  %v3678_v43 = vld [vmem:[%s5857_s3 + $0xd0] sm:$0xff] }
 0x40b   : > { %4770 = vtanh.f32 %v4609_v45  ;;  %v2223_v21 = vadd.f32 1.0, %v4751_v48  ;;  %v4753_v24 = vpop.eup %4752  ;;  %v4552_v45 = vpack.c.bf16 %v3699_v42, %v3698_v39  ;;  %v4532_v47 = vpack.c.bf16 %v3679_v44, %v3678_v43  ;;  %v3700_v48 = vld [vmem:[%s5858_s4 + $0xd0] sm:$0xff]  ;;  %v2398_v42 = vld [vmem:[#allocation3 + $0x18] sm:$0xff]  ;;  %v2397_v44 = vld [vmem:[#allocation3 + $0x10] sm:$0xff] }
 0x40c   : > { %4772 = vrcp.f32 %v2224_v49  ;;  %v3701_v49 = vld [vmem:[%s5858_s4 + $0xd8] sm:$0xff] }
 0x40d   : > { %v4755_v50 = vpop.eup %4754  ;;  %4774 = vrcp.f32 %v2223_v21  ;;  %v4556_v21 = vpack.c.bf16 %v3701_v49, %v3700_v48  ;;  %4553 = vmatprep.subr.bf16.mxu1 %v4552_v45  ;;  %v3686_v49 = vld [vmem:[%s5857_s3 + $0x110] sm:$0xff] }
 0x40e   : > { %v4757_v29 = vpop.eup %4756  ;;  %4776 = vtanh.f32 %v4610_v52  ;;  %v2226_v56 = vadd.f32 1.0, %v4755_v50  ;;  %v3680_v52 = vld [vmem:[%s5857_s3 + $0xe0] sm:$0xff]  ;;  %v3703_v50 = vld [vmem:[%s5858_s4 + $0xe8] sm:$0xff] }
 0x40f   : > { %v4759_v57 = vpop.eup %4758  ;;  %4778 = vtanh.f32 %v4611_v53  ;;  %v2225_v60 = vadd.f32 1.0, %v4757_v29  ;;  %v3681_v53 = vld [vmem:[%s5857_s3 + $0xe8] sm:$0xff] }
 0x410   : > { %v4761_v62 = vpop.eup %4760  ;;  %4780 = vrcp.f32 %v2226_v56  ;;  %v4536_v29 = vpack.c.bf16 %v3681_v53, %v3680_v52  ;;  %v3687_v52 = vld [vmem:[%s5857_s3 + $0x118] sm:$0xff] }
 0x411   : > { %v4763_v0 = vpop.eup %4762  ;;  %4782 = vrcp.f32 %v2225_v60  ;;  %v3683_v60 = vld [vmem:[%s5857_s3 + $0xf8] sm:$0xff] }
 0x412   : > { %v4765_v1 = vpop.eup %4764  ;;  %v2228_v2 = vadd.f32 1.0, %v4763_v0  ;;  %4784 = vtanh.f32 %v4612_v32  ;;  %v3704_v32 = vld [vmem:[%s5858_s4 + $0xf0] sm:$0xff] }
 0x413   : > { %v4767_v5 = vpop.eup %4766  ;;  %v2246_v55 = vmul.f32 %v4765_v1, %v4753_v24  ;;  %v3702_v24 = vld [vmem:[%s5858_s4 + $0xe0] sm:$0xff] }
 0x414   : > { %v4769_v6 = vpop.eup %4768  ;;  %4786 = vrcp.f32 %v2228_v2  ;;  %v2245_v7 = vmul.f32 %v4767_v5, %v4759_v57  ;;  %v4560_v56 = vpack.c.bf16 %v3703_v50, %v3702_v24  ;;  %v3682_v57 = vld [vmem:[%s5857_s3 + $0xf0] sm:$0xff]  ;;  %v5617_v2 = vld [vmem:[%s5866_s12 + $0x1] ss:$0 sm:$0xff] }
 0x415   : > { %v4771_v8 = vpop.eup %4770  ;;  %v2227_v10 = vadd.f32 1.0, %v4769_v6  ;;  %4788 = vtanh.f32 %v4613_v3  ;;  %v4540_v0 = vpack.c.bf16 %v3683_v60, %v3682_v57  ;;  %v5622_v3 = vld [vmem:[%s5864_s10 + $0x1] ss:$0 sm:$0xff] }
 0x416   : > { %v4773_v46 = vpop.eup %4772  ;;  %4248 = vmatprep.mubr.msk.f32.mxu0 %vm489_vm0, %v2245_v7  ;;  %4268 = vmatprep.mubr.msk.f32.mxu1 %vm489_vm0, %v2245_v7 }
 0x417   : > { %v4775_v11 = vpop.eup %4774  ;;  %4790 = vrcp.f32 %v2227_v10  ;;  %4249 = vmatmul.mubr.msk.f32.vlgmr.msra.gmra.mrb[24].mxu0 %vm489_vm0, %v2246_v55  ;;  %4269 = vmatmul.mubr.msk.f32.vlgmr.msra.gmra.mrb[28].mxu1 %vm489_vm0, %v2246_v55  ;;  %v2248_v54 = vmul.f32 %v4773_v46, %v4761_v62  ;;  %v3705_v62 = vld [vmem:[%s5858_s4 + $0xf8] sm:$0xff] }
 0x418   : > { %v4777_v12 = vpop.eup %4776  ;;  %v2247_v40 = vmul.f32 %v4775_v11, %v4771_v8  ;;  %4531 = vmatpush3.bf16.msra.mxu0 %v4528_v41  ;;  %4555 = vmatpush3.bf16.msra.mxu1 %v4552_v45  ;;  %v4564_v1 = vpack.c.bf16 %v3705_v62, %v3704_v32  ;;  %v2396_v46 = vld [vmem:[#allocation3 + $0x8] sm:$0xff] }
 0x419   : > { %v4779_v16 = vpop.eup %4778  ;;  %4533 = vmatprep.subr.bf16.mxu0 %v4532_v47  ;;  %4557 = vmatprep.subr.bf16.mxu1 %v4556_v21 }
 0x41a   : > { %v4781_v34 = vpop.eup %4780  ;;  %4251 = vmatprep.mubr.msk.f32.mxu0 %vm489_vm0, %v2247_v40  ;;  %4271 = vmatprep.mubr.msk.f32.mxu1 %vm489_vm0, %v2247_v40 }
 0x41b   : > { %v4783_v35 = vpop.eup %4782  ;;  %4252 = vmatmul.mubr.msk.f32.gmra.mrb[26].mxu0 %vm489_vm0, %v2248_v54  ;;  %4272 = vmatmul.mubr.msk.f32.gmra.mrb[30].mxu1 %vm489_vm0, %v2248_v54  ;;  %v2250_v58 = vmul.f32 %v4781_v34, %v4777_v12  ;;  %v2395_v54 = vld [vmem:[#allocation3] sm:$0xff]  ;;  %v3684_v34 = vld [vmem:[%s5857_s3 + $0x100] sm:$0xff] }
 0x41c   : > { %v2249_v59 = vmul.f32 %v4783_v35, %v4779_v16  ;;  %v4785_v19 = vpop.eup %4784  ;;  %4535 = vmatpush3.bf16.msra.mxu0 %v4532_v47  ;;  %4559 = vmatpush3.bf16.msra.mxu1 %v4556_v21  ;;  %v3685_v35 = vld [vmem:[%s5857_s3 + $0x108] sm:$0xff]  ;;  %v3708_v21 = vld [vmem:[%s5858_s4 + $0x110] sm:$0xff] }
 0x41d   : > { %4537 = vmatprep.subr.bf16.mxu0 %v4536_v29  ;;  %4561 = vmatprep.subr.bf16.mxu1 %v4560_v56 }
 0x41e   : > { %v4787_v25 = vpop.eup %4786  ;;  %4254 = vmatprep.mubr.msk.f32.mxu0 %vm489_vm0, %v2249_v59  ;;  %4274 = vmatprep.mubr.msk.f32.mxu1 %vm489_vm0, %v2249_v59 }
 0x41f   : > { %4255 = vmatmul.mubr.msk.f32.gmra.mrb[28].mxu0 %vm489_vm0, %v2250_v58  ;;  %4275 = vmatmul.mubr.msk.f32.gmra.mrb[32].mxu1 %vm489_vm0, %v2250_v58  ;;  %v2252_v26 = vmul.f32 %v4787_v25, %v4785_v19  ;;  %v4789_v28 = vpop.eup %4788  ;;  %v3706_v58 = vld [vmem:[%s5858_s4 + $0x100] sm:$0xff] }
 0x420   : > { %4539 = vmatpush3.bf16.msra.mxu0 %v4536_v29  ;;  %4563 = vmatpush3.bf16.msra.mxu1 %v4560_v56  ;;  %v4548_v29 = vpack.c.bf16 %v3687_v52, %v3686_v49  ;;  %v3709_v56 = vld [vmem:[%s5858_s4 + $0x118] sm:$0xff] }
 0x421   : > { %v4791_v14 = vpop.eup %4790  ;;  %4541 = vmatprep.subr.bf16.mxu0 %v4540_v0  ;;  %4565 = vmatprep.subr.bf16.mxu1 %v4564_v1 }
 0x422   : > { %v2251_v30 = vmul.f32 %v4791_v14, %v4789_v28  ;;  %v4544_v28 = vpack.c.bf16 %v3685_v35, %v3684_v34 }
 0x424   : > { %4257 = vmatprep.mubr.msk.f32.mxu0 %vm489_vm0, %v2251_v30  ;;  %4277 = vmatprep.mubr.msk.f32.mxu1 %vm489_vm0, %v2251_v30 }
 0x425   : > { %4258 = vmatmul.mubr.msk.f32.gmra.mrb[30].mxu0 %vm489_vm0, %v2252_v26  ;;  %4278 = vmatmul.mubr.msk.f32.gmra.mrb[34].mxu1 %vm489_vm0, %v2252_v26 }
 0x426   : > { %4543 = vmatpush3.bf16.msra.mxu0 %v4540_v0  ;;  %4567 = vmatpush3.bf16.msra.mxu1 %v4564_v1  ;;  %v4572_v1 = vpack.c.bf16 %v3709_v56, %v3708_v21 }
 0x427   : > { %4545 = vmatprep.subr.bf16.mxu0 %v4544_v28 }
 0x42a   : > { %4547 = vmatpush3.bf16.msra.mxu0 %v4544_v28 }
 0x42b   : > { %4549 = vmatprep.subr.bf16.mxu0 %v4548_v29 }
 0x42e   : > { %4551 = vmatpush3.bf16.msra.mxu0 %v4548_v29 }
 0x4ea   : > { %v4250_v5 = vpop.f32.mrb[24].mxu0  ;;  %v4270_v55 = vpop.f32.mrb[28].mxu1 }
 0x4eb   : > { %v2362_v6 = vadd.f32 %v4250_v5, %v5617_v2  ;;  %v2504_v7 = vadd.f32 %v4270_v55, %v5622_v3  ;;  %v2356_v8 = vpop.f32.mrb[25].mxu0  ;;  %v2498_v10 = vpop.f32.mrb[29].mxu1  ;;  %v2400_v5 = vld [vmem:[#allocation3 + $0x28] sm:$0xff] }
 0x4ec   : > { %v2357_v11 = vadd.f32 %v5617_v2, %v2356_v8  ;;  %v2499_v12 = vadd.f32 %v5622_v3, %v2498_v10  ;;  %v2399_v10 = vld [vmem:[#allocation3 + $0x20] sm:$0xff] }
 0x4ed   : > { %v2404_v40 = vadd.f32 %v2396_v46, %v2362_v6  ;;  %v2546_v16 = vadd.f32 %v2504_v7, %v5382_v4  ;;  %v3707_v4 = vld [vmem:[%s5858_s4 + $0x108] sm:$0xff] }
 0x4ee   : > { %v2403_v59 = vadd.f32 %v2395_v54, %v2357_v11  ;;  %v2545_v19 = vadd.f32 %v2499_v12, %v5389_v9  ;;  %v4253_v25 = vpop.f32.mrb[26].mxu0  ;;  %v4273_v26 = vpop.f32.mrb[30].mxu1  ;;  %v4568_v41 = vpack.c.bf16 %v3707_v4, %v3706_v58 }
 0x4ef   : > { %2412 = vst.msk [vmem:[#allocation3 + $0x8] sm:$0xff] %vm489_vm0, %v2404_v40  ;;  %v2554_v14 = vmul.f32 %v2546_v16, %v5314_v37  ;;  %v2372_v30 = vadd.f32 %v4253_v25, %v5617_v2  ;;  %v2514_v38 = vadd.f32 %v4273_v26, %v5622_v3  ;;  %v2366_v51 = vpop.f32.mrb[27].mxu0  ;;  %v2508_v39 = vpop.f32.mrb[31].mxu1 }
 0x4f0   : > { %2411 = vst.msk [vmem:[#allocation3] sm:$0xff] %vm489_vm0, %v2403_v59  ;;  %v2553_v9 = vmul.f32 %v2545_v19, %v5312_v36  ;;  %v2367_v43 = vadd.f32 %v5617_v2, %v2366_v51  ;;  %v2509_v45 = vadd.f32 %v5622_v3, %v2508_v39  ;;  %4569 = vmatprep.subr.bf16.mxu1 %v4568_v41  ;;  %v2402_v19 = vld [vmem:[#allocation3 + $0x38] sm:$0xff] }
 0x4f1   : > { %2562 = vst.msk [vmem:[#allocation2 + $0x10] sm:$0xff] %vm489_vm0, %v2554_v14  ;;  %v2406_v47 = vadd.f32 %v2398_v42, %v2372_v30  ;;  %v2548_v48 = vadd.f32 %v2514_v38, %v5400_v17  ;;  %4571 = vmatpush3.bf16.msra.mxu1 %v4568_v41  ;;  %v2401_v14 = vld [vmem:[#allocation3 + $0x30] sm:$0xff] }
 0x4f2   : > { %2561 = vst.msk [vmem:[#allocation2 + $0x8] sm:$0xff] %vm489_vm0, %v2553_v9  ;;  %v2405_v53 = vadd.f32 %v2397_v44, %v2367_v43  ;;  %v2547_v24 = vadd.f32 %v2509_v45, %v5417_v20  ;;  %v4256_v17 = vpop.f32.mrb[28].mxu0  ;;  %v4276_v50 = vpop.f32.mrb[32].mxu1  ;;  %4573 = vmatprep.subr.bf16.mxu1 %v4572_v1  ;;  %v3720_v45 = vld [vmem:[%s5861_s7 + $0x10] sm:$0xff] }
 0x4f3   : > { %2414 = vst.msk [vmem:[#allocation3 + $0x18] sm:$0xff] %vm489_vm0, %v2406_v47  ;;  %v2556_v57 = vmul.f32 %v2548_v48, %v5338_v15  ;;  %v2382_v60 = vadd.f32 %v4256_v17, %v5617_v2  ;;  %v2524_v32 = vadd.f32 %v4276_v50, %v5622_v3  ;;  %v2376_v62 = vpop.f32.mrb[29].mxu0  ;;  %v2518_v0 = vpop.f32.mrb[33].mxu1  ;;  %4352 = vmatprep.subr.mxu0 %v3720_v45 }
 0x4f4   : > { %2413 = vst.msk [vmem:[#allocation3 + $0x10] sm:$0xff] %vm489_vm0, %v2405_v53  ;;  %v2555_v20 = vmul.f32 %v2547_v24, %v5353_v22  ;;  %v2377_v55 = vadd.f32 %v5617_v2, %v2376_v62  ;;  %v2519_v6 = vadd.f32 %v5622_v3, %v2518_v0 }
 0x4f5   : > { %2564 = vst.msk [vmem:[#allocation2 + $0x20] sm:$0xff] %vm489_vm0, %v2556_v57  ;;  %v2408_v7 = vadd.f32 %v2400_v5, %v2382_v60  ;;  %v2550_v8 = vadd.f32 %v2524_v32, %v5421_v23  ;;  %4575 = vmatpush3.bf16.msra.mxu1 %v4572_v1 }
 0x4f6   : > { %2563 = vst.msk [vmem:[#allocation2 + $0x18] sm:$0xff] %vm489_vm0, %v2555_v20  ;;  %v2407_v46 = vadd.f32 %v2399_v10, %v2377_v55  ;;  %v2549_v11 = vadd.f32 %v2519_v6, %v5427_v27 }
 0x4f7   : > { %2416 = vst.msk [vmem:[#allocation3 + $0x28] sm:$0xff] %vm489_vm0, %v2408_v7  ;;  %v2558_v54 = vmul.f32 %v2550_v8, %v5372_v61 }
 0x4f8   : > { %2415 = vst.msk [vmem:[#allocation3 + $0x20] sm:$0xff] %vm489_vm0, %v2407_v46  ;;  %v2557_v12 = vmul.f32 %v2549_v11, %v5376_v63  ;;  %v4259_v40 = vpop.f32.mrb[30].mxu0  ;;  %v4279_v16 = vpop.f32.mrb[34].mxu1  ;;  %v2578_v23 = vld [vmem:[#allocation2 + $0x10] sm:$0xff] }
 0x4f9   : > { %2566 = vst.msk [vmem:[#allocation2 + $0x30] sm:$0xff] %vm489_vm0, %v2558_v54  ;;  %v2392_v34 = vadd.f32 %v4259_v40, %v5617_v2  ;;  %v2534_v35 = vadd.f32 %v4279_v16, %v5622_v3  ;;  %v2386_v58 = vpop.f32.mrb[31].mxu0  ;;  %v2528_v27 = vpop.f32.mrb[35].mxu1  ;;  %2596 = vrot.lane.b32.xlu0 %v2578_v23, %s4858_s27  ;;  %v2577_v59 = vld [vmem:[#allocation2 + $0x8] sm:$0xff] }
 0x4fa   : > { %2565 = vst.msk [vmem:[#allocation2 + $0x28] sm:$0xff] %vm489_vm0, %v2557_v12  ;;  %v2387_v25 = vadd.f32 %v5617_v2, %v2386_v58  ;;  %v2529_v26 = vadd.f32 %v5622_v3, %v2528_v27  ;;  %2594 = vrot.lane.b32.xlu1 %v2577_v59, %s4858_s27  ;;  %v2570_v41 = vld [vmem:[#allocation2 + $0xc] sm:$0xff]  ;;  %v2569_v50 = vld [vmem:[#allocation2 + $0x4] sm:$0xff] }
 0x4fb   : > { %v2410_v28 = vadd.f32 %v2402_v19, %v2392_v34  ;;  %v2552_v4 = vadd.f32 %v2534_v35, %v5434_v31  ;;  %v3729_v31 = vld [vmem:[%s5862_s8 + $0x10] sm:$0xff] }
 0x4fc   : > { %v2409_v30 = vadd.f32 %v2401_v14, %v2387_v25  ;;  %v2551_v38 = vadd.f32 %v2529_v26, %v5440_v33  ;;  %v2580_v51 = vld [vmem:[#allocation2 + $0x20] sm:$0xff]  ;;  %4366 = vmatprep.subr.mxu1 %v3729_v31  ;;  %v4842_v14 = vld [vmem:[%s5126_s26 + $0x10] sm:$0xff] }
 0x4fd   : > { %2418 = vst.msk [vmem:[#allocation3 + $0x38] sm:$0xff] %vm489_vm0, %v2410_v28  ;;  %v2560_v39 = vmul.f32 %v2552_v4, %v5397_v13  ;;  %2600 = vrot.lane.b32.xlu0 %v2580_v51, %s4858_s27  ;;  %v2571_v33 = vld [vmem:[#allocation2 + $0x14] sm:$0xff]  ;;  %v2572_v42 = vld [vmem:[#allocation2 + $0x1c] sm:$0xff]  ;;  %v4841_v4 = vld [vmem:[%s5126_s26 + $0x8] sm:$0xff] }
 0x4fe   : > { %2417 = vst.msk [vmem:[#allocation3 + $0x30] sm:$0xff] %vm489_vm0, %v2409_v30  ;;  %v2559_v2 = vmul.f32 %v2551_v38, %v5402_v18  ;;  %2626 = vrot.lane.b32.xlu1 %v2570_v41, %s4857_s14  ;;  %v2579_v3 = vld [vmem:[#allocation2 + $0x18] sm:$0xff]  ;;  %v4840_v28 = vld [vmem:[%s5126_s26] sm:$0xff]  ;;  %v4845_v51 = vld [vmem:[%s5126_s26 + $0x28] sm:$0xff] }
 0x4ff   : > { %2568 = vst.msk [vmem:[#allocation2 + $0x40] sm:$0xff] %vm489_vm0, %v2560_v39  ;;  %v4843_v30 = vld [vmem:[%s5126_s26 + $0x18] sm:$0xff]  ;;  %v4844_v38 = vld [vmem:[%s5126_s26 + $0x20] sm:$0xff]  ;;  %v4846_v39 = vld [vmem:[%s5126_s26 + $0x30] sm:$0xff] }
 0x500   : > { %2567 = vst.msk [vmem:[#allocation2 + $0x38] sm:$0xff] %vm489_vm0, %v2559_v2  ;;  %v2582_v9 = vld [vmem:[#allocation2 + $0x30] sm:$0xff]  ;;  %v3746_v2 = vld [vmem:[%s5865_s11 + $0x40] sm:$0xff] }
 0x501   : > { %2628 = vrot.lane.b32.xlu0 %v2571_v33, %s4857_s14  ;;  %v2573_v43 = vld [vmem:[#allocation2 + $0x24] sm:$0xff]  ;;  %v2574_v48 = vld [vmem:[#allocation2 + $0x2c] sm:$0xff] }
 0x502   : > { %2598 = vrot.lane.b32.xlu1 %v2579_v3, %s4858_s27  ;;  %v2581_v44 = vld [vmem:[#allocation2 + $0x28] sm:$0xff]  ;;  %v3748_v3 = vld [vmem:[%s5865_s11 + $0x50] sm:$0xff] }
 0x505   : > { %2604 = vrot.lane.b32.xlu0 %v2582_v9, %s4858_s27  ;;  %v3749_v9 = vld [vmem:[%s5865_s11 + $0x58] sm:$0xff] }
 0x506   : > { %2630 = vrot.lane.b32.xlu1 %v2572_v42, %s4857_s14  ;;  %v2584_v47 = vld [vmem:[#allocation2 + $0x40] sm:$0xff] }
 0x507   : > { %v2575_v49 = vld [vmem:[#allocation2 + $0x34] sm:$0xff]  ;;  %v2585_v21 = vld [vmem:[#allocation2 + $0x44] sm:$0xff]  ;;  %v2576_v53 = vld [vmem:[#allocation2 + $0x3c] sm:$0xff] }
 0x508   : > { %v2583_v52 = vld [vmem:[#allocation2 + $0x38] sm:$0xff] }
 0x509   : > { %2632 = vrot.lane.b32.xlu0 %v2573_v43, %s4857_s14 }
 0x50a   : > { %2602 = vrot.lane.b32.xlu1 %v2581_v44, %s4858_s27 }
 0x50d   : > { %2608 = vrot.lane.b32.xlu0 %v2584_v47, %s4858_s27 }
 0x50e   : > { %2634 = vrot.lane.b32.xlu1 %v2574_v48, %s4857_s14 }
 0x511   : > { %2636 = vrot.lane.b32.xlu0 %v2575_v49, %s4857_s14 }
 0x512   : > { %2606 = vrot.lane.b32.xlu1 %v2583_v52, %s4858_s27  ;;  %s5821_s27 = scalar_lea.vmem %s5867_s13, %s4999_s18 }
 0x515   : > { %2640 = vrot.lane.b32.xlu0 %v2585_v21, %s4857_s14 }
 0x516   : > { %2638 = vrot.lane.b32.xlu1 %v2576_v53, %s4857_s14 }
 0x56b   : > { %v2597_v24 = vpop.permute.xlu0 %2596 }
 0x56c   : > { %v2595_v17 = vpop.permute.xlu1 %2594  ;;  %v2651_v32 = vsel %vm489_vm0, %v2570_v41, %v2597_v24  ;;  %v4847_v41 = vld [vmem:[%s5126_s26 + $0x38] sm:$0xff] }
 0x56d   : > { %v2650_v56 = vsel %vm489_vm0, %v2569_v50, %v2595_v17  ;;  %v5792_v50 = vld [vmem:[%s5859_s5 + $0x2] ss:$0 sm:$0xff] }
 0x56f   : > { %v2601_v29 = vpop.permute.xlu0 %2600 }
 0x570   : > { %v2627_v57 = vpop.permute.xlu1 %2626  ;;  %v2653_v7 = vsel %vm489_vm0, %v2572_v42, %v2601_v29  ;;  %v4580_v42 = vpack.c.bf16 %v3749_v9, %v3748_v3 }
 0x571   : > { %v2658_v60 = vsel %vm628_vm1, %v2650_v56, %v2627_v57 }
 0x572   : > { %4304 = vmatprep.mubr.msk.f32.mxu0 %vm656_vm2, %v2658_v60  ;;  %4340 = vmatprep.mubr.msk.f32.mxu1 %vm656_vm2, %v2658_v60 }
 0x573   : > { %v2629_v62 = vpop.permute.xlu0 %2628 }
 0x574   : > { %v2659_v0 = vsel %vm628_vm1, %v2651_v32, %v2629_v62  ;;  %v2599_v1 = vpop.permute.xlu1 %2598 }
 0x575   : > { %4305 = vmatmul.mubr.msk.f32.vlgmr.msra.gmra.mrb[32].mxu0 %vm656_vm2, %v2659_v0  ;;  %4341 = vmatmul.mubr.msk.f32.vlgmr.msra.gmra.mrb[36].mxu1 %vm656_vm2, %v2659_v0  ;;  %v2652_v5 = vsel %vm489_vm0, %v2571_v33, %v2599_v1 }
 0x576   : > { %4367 = vmatpush3.msra.mxu1 %v3729_v31  ;;  %4353 = vmatpush3.msra.mxu0 %v3720_v45  ;;  %v3747_v31 = vld [vmem:[%s5865_s11 + $0x48] sm:$0xff] }
 0x577   : > { %v2605_v20 = vpop.permute.xlu0 %2604  ;;  %v4576_v33 = vpack.c.bf16 %v3747_v31, %v3746_v2 }
 0x578   : > { %v2631_v55 = vpop.permute.xlu1 %2630  ;;  %v2655_v16 = vsel %vm489_vm0, %v2574_v48, %v2605_v20 }
 0x579   : > { %v2660_v6 = vsel %vm628_vm1, %v2652_v5, %v2631_v55  ;;  %4577 = vmatprep.subr.bf16.mxu0 %v4576_v33 }
 0x57a   : > { %4307 = vmatprep.mubr.msk.f32.mxu0 %vm656_vm2, %v2660_v6  ;;  %4343 = vmatprep.mubr.msk.f32.mxu1 %vm656_vm2, %v2660_v6 }
 0x57b   : > { %v2633_v8 = vpop.permute.xlu0 %2632 }
 0x57c   : > { %v2661_v10 = vsel %vm628_vm1, %v2653_v7, %v2633_v8  ;;  %v2603_v46 = vpop.permute.xlu1 %2602 }
 0x57d   : > { %4308 = vmatmul.mubr.msk.f32.gmra.mrb[34].mxu0 %vm656_vm2, %v2661_v10  ;;  %4344 = vmatmul.mubr.msk.f32.gmra.mrb[38].mxu1 %vm656_vm2, %v2661_v10  ;;  %v2654_v54 = vsel %vm489_vm0, %v2573_v43, %v2603_v46  ;;  %v3711_v43 = vld [vmem:[%s5860_s6 + $0x2] ss:$0 sm:$0xff] }
 0x57f   : > { %v2609_v11 = vpop.permute.xlu0 %2608 }
 0x580   : > { %v2635_v12 = vpop.permute.xlu1 %2634  ;;  %v2657_v19 = vsel %vm489_vm0, %v2576_v53, %v2609_v11 }
 0x581   : > { %v2662_v40 = vsel %vm628_vm1, %v2654_v54, %v2635_v12 }
 0x582   : > { %4310 = vmatprep.mubr.msk.f32.mxu0 %vm656_vm2, %v2662_v40  ;;  %4346 = vmatprep.mubr.msk.f32.mxu1 %vm656_vm2, %v2662_v40 }
 0x583   : > { %v2637_v23 = vpop.permute.xlu0 %2636 }
 0x584   : > { %v2663_v34 = vsel %vm628_vm1, %v2655_v16, %v2637_v23  ;;  %v2607_v35 = vpop.permute.xlu1 %2606 }
 0x585   : > { %4311 = vmatmul.mubr.msk.f32.gmra.mrb[36].mxu0 %vm656_vm2, %v2663_v34  ;;  %4347 = vmatmul.mubr.msk.f32.gmra.mrb[40].mxu1 %vm656_vm2, %v2663_v34  ;;  %v2656_v27 = vsel %vm489_vm0, %v2575_v49, %v2607_v35 }
 0x587   : > { %v2641_v58 = vpop.permute.xlu0 %2640 }
 0x588   : > { %v2639_v59 = vpop.permute.xlu1 %2638  ;;  %v2665_v26 = vsel %vm628_vm1, %v2657_v19, %v2641_v58 }
 0x589   : > { %v2664_v25 = vsel %vm628_vm1, %v2656_v27, %v2639_v59 }
 0x58a   : > { %4313 = vmatprep.mubr.msk.f32.mxu0 %vm656_vm2, %v2664_v25  ;;  %4349 = vmatprep.mubr.msk.f32.mxu1 %vm656_vm2, %v2664_v25 }
 0x58b   : > { %4314 = vmatmul.mubr.msk.f32.gmra.mrb[38].mxu0 %vm656_vm2, %v2665_v26  ;;  %4350 = vmatmul.mubr.msk.f32.gmra.mrb[42].mxu1 %vm656_vm2, %v2665_v26 }
 0x58c   : > { %4354 = vmatprep.mubr.msk.f32.mxu0 %vm911_vm3, %v4840_v28  ;;  %4368 = vmatprep.mubr.msk.f32.mxu1 %vm911_vm3, %v4840_v28 }
 0x58f   : > { %4355 = vmatmul.mubr.msk.f32.vlgmr.msra.gmra.mrb[32].mxu0 %vm911_vm3, %v4841_v4  ;;  %4369 = vmatmul.mubr.msk.f32.vlgmr.msra.gmra.mrb[36].mxu1 %vm911_vm3, %v4841_v4 }
 0x590   : > { %4357 = vmatprep.mubr.msk.f32.mxu0 %vm911_vm3, %v4842_v14  ;;  %4371 = vmatprep.mubr.msk.f32.mxu1 %vm911_vm3, %v4842_v14 }
 0x591   : > { %4579 = vmatpush3.bf16.msra.mxu0 %v4576_v33 }
 0x592   : > { %4581 = vmatprep.subr.bf16.mxu0 %v4580_v42 }
 0x593   : > { %4358 = vmatmul.mubr.msk.f32.gmra.mrb[34].mxu0 %vm911_vm3, %v4843_v30  ;;  %4372 = vmatmul.mubr.msk.f32.gmra.mrb[38].mxu1 %vm911_vm3, %v4843_v30 }
 0x594   : > { %4360 = vmatprep.mubr.msk.f32.mxu0 %vm911_vm3, %v4844_v38  ;;  %4374 = vmatprep.mubr.msk.f32.mxu1 %vm911_vm3, %v4844_v38 }
 0x595   : > { %4583 = vmatpush3.bf16.msra.mxu0 %v4580_v42 }
 0x597   : > { %4361 = vmatmul.mubr.msk.f32.gmra.mrb[36].mxu0 %vm911_vm3, %v4845_v51  ;;  %4375 = vmatmul.mubr.msk.f32.gmra.mrb[40].mxu1 %vm911_vm3, %v4845_v51 }
 0x598   : > { %4363 = vmatprep.mubr.msk.f32.mxu0 %vm911_vm3, %v4846_v39  ;;  %4377 = vmatprep.mubr.msk.f32.mxu1 %vm911_vm3, %v4846_v39 }
 0x59b   : > { %4364 = vmatmul.mubr.msk.f32.gmra.mrb[38].mxu0 %vm911_vm3, %v4847_v41  ;;  %4378 = vmatmul.mubr.msk.f32.gmra.mrb[42].mxu1 %vm911_vm3, %v4847_v41 }
 0x662   : > { %v4356_v44 = vpop.f32.mrb[32].mxu0  ;;  %v4370_v45 = vpop.f32.mrb[36].mxu1 }
 0x663   : > { %v4630_v47 = vadd.f32 %v4370_v45, %v3711_v43  ;;  %v3010_v48 = vpop.f32.mrb[33].mxu0  ;;  %v3125_v49 = vpop.f32.mrb[37].mxu1  ;;  %v4622_v62 = vadd.f32 %v4356_v44, %v5792_v50 }
 0x664   : > { %v4631_v52 = vadd.f32 %v3711_v43, %v3125_v49  ;;  %v4623_v8 = vadd.f32 %v5792_v50, %v3010_v48 }
 0x665   : > { %v3739_v21 = vmul.f32 -1.442695, %v4630_v47 }
 0x666   : > { %v3738_v53 = vmul.f32 -1.442695, %v4631_v52  ;;  %v4359_v24 = vpop.f32.mrb[34].mxu0  ;;  %v4373_v17 = vpop.f32.mrb[38].mxu1 }
 0x667   : > { %4792 = vpow2.f32 %v3739_v21  ;;  %v4632_v29 = vadd.f32 %v4373_v17, %v3711_v43  ;;  %v3020_v56 = vpop.f32.mrb[35].mxu0  ;;  %v3135_v57 = vpop.f32.mrb[39].mxu1  ;;  %v4624_v46 = vadd.f32 %v4359_v24, %v5792_v50 }
 0x668   : > { %4794 = vpow2.f32 %v3738_v53  ;;  %v4633_v60 = vadd.f32 %v3711_v43, %v3135_v57  ;;  %v4625_v26 = vadd.f32 %v5792_v50, %v3020_v56 }
 0x669   : > { %v3741_v32 = vmul.f32 -1.442695, %v4632_v29 }
 0x66a   : > { %v3740_v0 = vmul.f32 -1.442695, %v4633_v60  ;;  %v4362_v1 = vpop.f32.mrb[36].mxu0  ;;  %v4376_v20 = vpop.f32.mrb[40].mxu1 }
 0x66b   : > { %4796 = vpow2.f32 %v3741_v32  ;;  %v4634_v5 = vadd.f32 %v4376_v20, %v3711_v43  ;;  %v3030_v55 = vpop.f32.mrb[37].mxu0  ;;  %v3145_v6 = vpop.f32.mrb[41].mxu1  ;;  %v4626_v30 = vadd.f32 %v4362_v1, %v5792_v50 }
 0x66c   : > { %4798 = vpow2.f32 %v3740_v0  ;;  %v4635_v7 = vadd.f32 %v3711_v43, %v3145_v6  ;;  %v4627_v51 = vadd.f32 %v5792_v50, %v3030_v55 }
 0x66d   : > { %v3743_v10 = vmul.f32 -1.442695, %v4634_v5  ;;  %4800 = vtanh.f32 %v4622_v62 }
 0x66e   : > { %v3742_v11 = vmul.f32 -1.442695, %v4635_v7  ;;  %v4365_v54 = vpop.f32.mrb[38].mxu0  ;;  %v4379_v12 = vpop.f32.mrb[42].mxu1 }
 0x66f   : > { %4802 = vpow2.f32 %v3743_v10  ;;  %v4636_v40 = vadd.f32 %v4379_v12, %v3711_v43  ;;  %v3040_v16 = vpop.f32.mrb[39].mxu0  ;;  %v3155_v23 = vpop.f32.mrb[43].mxu1  ;;  %v4628_v9 = vadd.f32 %v4365_v54, %v5792_v50  ;;  %v3751_v10 = vld [vmem:[%s5866_s12 + $0x2] ss:$0 sm:$0xff]  ;;  %v3379_v12 = vld [vmem:[#allocation3 + $0x8] sm:$0xff] }
 0x670   : > { %4804 = vpow2.f32 %v3742_v11  ;;  %v4637_v34 = vadd.f32 %v3711_v43, %v3155_v23  ;;  %v4629_v47 = vadd.f32 %v5792_v50, %v3040_v16  ;;  %v3378_v23 = vld [vmem:[#allocation3] sm:$0xff] }
 0x671   : > { %v4793_v35 = vpop.eup %4792  ;;  %4806 = vtanh.f32 %v4623_v8  ;;  %v3745_v58 = vmul.f32 -1.442695, %v4636_v40 }
 0x672   : > { %v4795_v27 = vpop.eup %4794  ;;  %v3205_v59 = vadd.f32 1.0, %v4793_v35  ;;  %4808 = vtanh.f32 %v4624_v46  ;;  %v3744_v19 = vmul.f32 -1.442695, %v4637_v34 }
 0x673   : > { %v3204_v25 = vadd.f32 1.0, %v4795_v27  ;;  %4810 = vpow2.f32 %v3745_v58 }
 0x674   : > { %4812 = vrcp.f32 %v3205_v59  ;;  %v3381_v59 = vld [vmem:[#allocation3 + $0x18] sm:$0xff] }
 0x675   : > { %v4797_v28 = vpop.eup %4796  ;;  %4814 = vrcp.f32 %v3204_v25 }
 0x676   : > { %v4799_v4 = vpop.eup %4798  ;;  %v3207_v14 = vadd.f32 1.0, %v4797_v28  ;;  %4816 = vpow2.f32 %v3744_v19 }
 0x677   : > { %4818 = vtanh.f32 %v4625_v26  ;;  %v3206_v38 = vadd.f32 1.0, %v4799_v4  ;;  %v4801_v39 = vpop.eup %4800  ;;  %v3380_v26 = vld [vmem:[#allocation3 + $0x10] sm:$0xff] }
 0x678   : > { %4820 = vrcp.f32 %v3207_v14 }
 0x679   : > { %v4803_v41 = vpop.eup %4802  ;;  %4822 = vrcp.f32 %v3206_v38  ;;  %v3383_v38 = vld [vmem:[#allocation3 + $0x28] sm:$0xff] }
 0x67a   : > { %v4805_v2 = vpop.eup %4804  ;;  %4824 = vtanh.f32 %v4626_v30  ;;  %v3209_v31 = vadd.f32 1.0, %v4803_v41  ;;  %v3382_v41 = vld [vmem:[#allocation3 + $0x20] sm:$0xff] }
 0x67b   : > { %v4807_v33 = vpop.eup %4806  ;;  %4826 = vtanh.f32 %v4627_v51  ;;  %v3208_v3 = vadd.f32 1.0, %v4805_v2 }
 0x67c   : > { %v4809_v42 = vpop.eup %4808  ;;  %4828 = vrcp.f32 %v3209_v31 }
 0x67d   : > { %v4811_v43 = vpop.eup %4810  ;;  %4830 = vrcp.f32 %v3208_v3 }
 0x67e   : > { %v4813_v44 = vpop.eup %4812  ;;  %v3211_v45 = vadd.f32 1.0, %v4811_v43  ;;  %4832 = vtanh.f32 %v4628_v9 }
 0x67f   : > { %v4815_v48 = vpop.eup %4814  ;;  %v3229_v49 = vmul.f32 %v4813_v44, %v4801_v39 }
 0x680   : > { %v4817_v52 = vpop.eup %4816  ;;  %4834 = vrcp.f32 %v3211_v45  ;;  %v3228_v21 = vmul.f32 %v4815_v48, %v4807_v33 }
 0x681   : > { %v4819_v53 = vpop.eup %4818  ;;  %v3210_v24 = vadd.f32 1.0, %v4817_v52  ;;  %4836 = vtanh.f32 %v4629_v47  ;;  %v3385_v47 = vld [vmem:[#allocation3 + $0x38] sm:$0xff]  ;;  %v3384_v52 = vld [vmem:[#allocation3 + $0x30] sm:$0xff] }
 0x682   : > { %v4821_v17 = vpop.eup %4820  ;;  %4388 = vmatprep.mubr.msk.f32.mxu0 %vm489_vm0, %v3228_v21 }
 0x683   : > { %v4823_v29 = vpop.eup %4822  ;;  %4838 = vrcp.f32 %v3210_v24  ;;  %4389 = vmatmul.mubr.msk.f32.vlgmr.msra.gmra.mrb[40].mxu0 %vm489_vm0, %v3229_v49  ;;  %v3231_v56 = vmul.f32 %v4821_v17, %v4809_v42 }
 0x684   : > { %v4825_v57 = vpop.eup %4824  ;;  %v3230_v60 = vmul.f32 %v4823_v29, %v4819_v53 }
 0x685   : > { %v4827_v50 = vpop.eup %4826 }
 0x686   : > { %v4829_v32 = vpop.eup %4828  ;;  %4391 = vmatprep.mubr.msk.f32.mxu0 %vm489_vm0, %v3230_v60 }
 0x687   : > { %v4831_v62 = vpop.eup %4830  ;;  %4392 = vmatmul.mubr.msk.f32.gmra.mrb[42].mxu0 %vm489_vm0, %v3231_v56  ;;  %v3233_v0 = vmul.f32 %v4829_v32, %v4825_v57 }
 0x688   : > { %v3232_v1 = vmul.f32 %v4831_v62, %v4827_v50  ;;  %v4833_v20 = vpop.eup %4832 }
 0x68a   : > { %v4835_v5 = vpop.eup %4834  ;;  %4394 = vmatprep.mubr.msk.f32.mxu0 %vm489_vm0, %v3232_v1 }
 0x68b   : > { %4395 = vmatmul.mubr.msk.f32.gmra.mrb[44].mxu0 %vm489_vm0, %v3233_v0  ;;  %v3235_v55 = vmul.f32 %v4835_v5, %v4833_v20  ;;  %v4837_v6 = vpop.eup %4836 }
 0x68d   : > { %v4839_v7 = vpop.eup %4838 }
 0x68e   : > { %v3234_v8 = vmul.f32 %v4839_v7, %v4837_v6 }
 0x690   : > { %4397 = vmatprep.mubr.msk.f32.mxu0 %vm489_vm0, %v3234_v8 }
 0x691   : > { %4398 = vmatmul.mubr.msk.f32.gmra.mrb[46].mxu0 %vm489_vm0, %v3235_v55 }
 0x756   : > { %v4390_v46 = vpop.f32.mrb[40].mxu0 }
 0x757   : > { %v3345_v11 = vadd.f32 %v4390_v46, %v3751_v10  ;;  %v3339_v54 = vpop.f32.mrb[41].mxu0 }
 0x758   : > { %v3340_v40 = vadd.f32 %v3751_v10, %v3339_v54 }
 0x759   : > { %v3387_v16 = vadd.f32 %v3379_v12, %v3345_v11 }
 0x75a   : > { %v3386_v34 = vadd.f32 %v3378_v23, %v3340_v40  ;;  %v4393_v35 = vpop.f32.mrb[42].mxu0 }
 0x75b   : > { %3395 = vst.msk [vmem:[#allocation3 + $0x8] sm:$0xff] %vm489_vm0, %v3387_v16  ;;  %v3355_v58 = vadd.f32 %v4393_v35, %v3751_v10  ;;  %v3349_v27 = vpop.f32.mrb[43].mxu0 }
 0x75c   : > { %3394 = vst.msk [vmem:[#allocation3] sm:$0xff] %vm489_vm0, %v3386_v34  ;;  %v3350_v19 = vadd.f32 %v3751_v10, %v3349_v27 }
 0x75d   : > { %v3389_v25 = vadd.f32 %v3381_v59, %v3355_v58 }
 0x75e   : > { %v3388_v28 = vadd.f32 %v3380_v26, %v3350_v19  ;;  %v4396_v4 = vpop.f32.mrb[44].mxu0 }
 0x75f   : > { %3397 = vst.msk [vmem:[#allocation3 + $0x18] sm:$0xff] %vm489_vm0, %v3389_v25  ;;  %v3365_v14 = vadd.f32 %v4396_v4, %v3751_v10  ;;  %v3359_v30 = vpop.f32.mrb[45].mxu0 }
 0x760   : > { %3396 = vst.msk [vmem:[#allocation3 + $0x10] sm:$0xff] %vm489_vm0, %v3388_v28  ;;  %v3360_v51 = vadd.f32 %v3751_v10, %v3359_v30 }
 0x761   : > { %v3391_v39 = vadd.f32 %v3383_v38, %v3365_v14 }
 0x762   : > { %v3403_v2 = vld [vmem:[#allocation3 + $0x8] sm:$0xff]  ;;  %v3390_v31 = vadd.f32 %v3382_v41, %v3360_v51 }
 0x763   : > { %v3411_v33 = vmul.f32 %v3403_v2, %v5314_v37  ;;  %v3402_v3 = vld [vmem:[#allocation3] sm:$0xff]  ;;  %3399 = vst.msk [vmem:[#allocation3 + $0x28] sm:$0xff] %vm489_vm0, %v3391_v39 }
 0x764   : > { %v3410_v9 = vmul.f32 %v3402_v3, %v5312_v36  ;;  %3398 = vst.msk [vmem:[#allocation3 + $0x20] sm:$0xff] %vm489_vm0, %v3390_v31  ;;  %v4399_v42 = vpop.f32.mrb[46].mxu0 }
 0x765   : > { %3419 = vst.msk [vmem:[%s5821_s27 + $0x8] sm:$0xff] %vm489_vm0, %v3411_v33  ;;  %v3375_v43 = vadd.f32 %v4399_v42, %v3751_v10  ;;  %v3369_v44 = vpop.f32.mrb[47].mxu0 }
 0x766   : > { %3418 = vst.msk [vmem:[%s5821_s27] sm:$0xff] %vm489_vm0, %v3410_v9  ;;  %v3405_v45 = vld [vmem:[#allocation3 + $0x18] sm:$0xff]  ;;  %v3370_v37 = vadd.f32 %v3751_v10, %v3369_v44 }
 0x767   : > { %v3413_v48 = vmul.f32 %v3405_v45, %v5338_v15  ;;  %v3404_v49 = vld [vmem:[#allocation3 + $0x10] sm:$0xff]  ;;  %v3393_v36 = vadd.f32 %v3385_v47, %v3375_v43 }
 0x768   : > { %v3412_v21 = vmul.f32 %v3404_v49, %v5353_v22  ;;  %v3392_v53 = vadd.f32 %v3384_v52, %v3370_v37 }
 0x769   : > { %3421 = vst.msk [vmem:[%s5821_s27 + $0x18] sm:$0xff] %vm489_vm0, %v3413_v48  ;;  %3401 = vst.msk [vmem:[#allocation3 + $0x38] sm:$0xff] %vm489_vm0, %v3393_v36 }
 0x76a   : > { %3420 = vst.msk [vmem:[%s5821_s27 + $0x10] sm:$0xff] %vm489_vm0, %v3412_v21  ;;  %v3407_v24 = vld [vmem:[#allocation3 + $0x28] sm:$0xff]  ;;  %3400 = vst.msk [vmem:[#allocation3 + $0x30] sm:$0xff] %vm489_vm0, %v3392_v53 }
 0x76b   : > { %v3415_v17 = vmul.f32 %v3407_v24, %v5372_v61  ;;  %v3406_v15 = vld [vmem:[#allocation3 + $0x20] sm:$0xff] }
 0x76c   : > { %v3414_v29 = vmul.f32 %v3406_v15, %v5376_v63 }
 0x76d   : > { %3423 = vst.msk [vmem:[%s5821_s27 + $0x28] sm:$0xff] %vm489_vm0, %v3415_v17 }
 0x76e   : > { %3422 = vst.msk [vmem:[%s5821_s27 + $0x20] sm:$0xff] %vm489_vm0, %v3414_v29 }
 0x770   : > { %v3409_v22 = vld [vmem:[#allocation3 + $0x38] sm:$0xff] }
 0x771   : > { %v3417_v56 = vmul.f32 %v3409_v22, %v5397_v13  ;;  %v3408_v57 = vld [vmem:[#allocation3 + $0x30] sm:$0xff] }
 0x772   : > { %v3416_v60 = vmul.f32 %v3408_v57, %v5402_v18 }
 0x773   : > { %3425 = vst.msk [vmem:[%s5821_s27 + $0x38] sm:$0xff] %vm489_vm0, %v3417_v56 }
 0x774   : > { %3424 = vst.msk [vmem:[%s5821_s27 + $0x30] sm:$0xff] %vm489_vm0, %v3416_v60 }
 0x775 PF: > { %s23_s25 = sadd.s32 1, %s4854_s25  }
 0x776   : > { %p20_p4 = scmp.ge.s32.totalorder %s23_s25, 4  }
 0x778   :  { %22 = sbr.rel (!%p20_p4) target bundleno = 1 (0x1), region = 126 }

</bundles_post_ra>
